<compile_context>
chip_gen: v7x
topology: tpu7x:2x2x1
jax: 0.10.0
libtpu: 0.0.40
codegen_flags: <defaults>
</compile_context>

<pallas_src>
import numpy as np
import jax
import jax.numpy as jnp
from jax import lax
from jax.experimental import pallas as pl
from jax.experimental.pallas import tpu as pltpu


def _round_up(x, m):
    return ((x + m - 1) // m) * m


# ---------------------------------------------------------------------------
# Fused kernel: LSTM stack -> BatchNorm1d (train-mode stats) -> 3 dense layers
# ---------------------------------------------------------------------------
def make_fused_kernel(*, T, B_real, B_pad, H, num_layers):
    """Ref order:
         x_ref [T*B_pad, D]                      (time-major, batch zero-padded to B_pad)
         per layer l: w_ih_l [D_l,4H], w_hh_l [H,4H], bias_l [1,4H]
         gamma [1,H], beta [1,H],
         w1 [H,64], b1 [1,64], w2 [64,32], b2 [1,32], w3 [32,no_cls], b3 [1,no_cls]
         out_ref [B_real, no_cls]
    """

    def kernel(*refs):
        x_ref = refs[0]
        lstm_refs = refs[1:1 + 3 * num_layers]
        base = 1 + 3 * num_layers
        (gamma_ref, beta_ref, w1_ref, c1_ref, w2_ref, c2_ref,
         w3_ref, c3_ref) = refs[base:base + 8]
        out_ref = refs[base + 8]

        # ---- Hoisted layer-0 input projection: ONE [T*B_pad, D] x [D, 4H] matmul ----
        # Time-major layout => rows [t*B_pad : (t+1)*B_pad] are step t (tile-aligned).
        pre_gates = (jnp.dot(x_ref[...], lstm_refs[0][...],
                             preferred_element_type=jnp.float32)
                     + lstm_refs[2][...])                               # [T*B_pad, 4H]

        # ---- Load the (tiny) recurrent weights once, outside the time loop ----
        w_hh = [lstm_refs[3 * l + 1][...] for l in range(num_layers)]
        w_ih_rest = [lstm_refs[3 * l][...] for l in range(1, num_layers)]
        b_rest = [lstm_refs[3 * l + 2][...] for l in range(1, num_layers)]

        def cell(gates, c_prev):
            i_g = jax.nn.sigmoid(gates[:, 0 * H:1 * H])
            f_g = jax.nn.sigmoid(gates[:, 1 * H:2 * H])
            g_g = jnp.tanh(gates[:, 2 * H:3 * H])
            o_g = jax.nn.sigmoid(gates[:, 3 * H:4 * H])
            c_new = f_g * c_prev + i_g * g_g
            h_new = o_g * jnp.tanh(c_new)
            return h_new, c_new

        zero = jnp.zeros((B_pad, H), jnp.float32)
        hs = [zero] * num_layers
        cs = [zero] * num_layers

        # ---- Fully-unrolled combined time loop (T static & small). h/c stay in
        # vregs; the visible dependency DAG lets the scheduler overlap layer l
        # step t with layer l-1 step t+1 (wavefront across layers). ----
        for t in range(T):
            # layer 0: pre-gates hoisted; contiguous, aligned slice for step t
            gates0 = (pre_gates[t * B_pad:(t + 1) * B_pad, :]
                      + jnp.dot(hs[0], w_hh[0],
                                preferred_element_type=jnp.float32))
            hs[0], cs[0] = cell(gates0, cs[0])
            # deeper layers: input projection of h_{l-1}[t] + recurrent matmul
            for l in range(1, num_layers):
                gates = (jnp.dot(hs[l - 1], w_ih_rest[l - 1],
                                 preferred_element_type=jnp.float32)
                         + jnp.dot(hs[l], w_hh[l],
                                   preferred_element_type=jnp.float32)
                         + b_rest[l - 1])
                hs[l], cs[l] = cell(gates, cs[l])

        latent = hs[num_layers - 1]                                     # [B_pad, H]

        # ---- BatchNorm1d: training-mode batch statistics over REAL rows only ----
        if B_pad > B_real:
            rows = lax.broadcasted_iota(jnp.int32, (B_pad, H), 0)
            valid = rows < B_real
            inv_n = 1.0 / B_real
            mean = jnp.sum(jnp.where(valid, latent, 0.0), axis=0,
                           keepdims=True) * inv_n
            diff = jnp.where(valid, latent - mean, 0.0)
            var = jnp.sum(diff * diff, axis=0, keepdims=True) * inv_n
        else:
            mean = jnp.mean(latent, axis=0, keepdims=True)
            var = jnp.mean((latent - mean) ** 2, axis=0, keepdims=True)
        y = (latent - mean) * lax.rsqrt(var + 1e-5) * gamma_ref[...] + beta_ref[...]

        # ---- Dense head: Linear(H,64) -> Linear(64,32) -> Linear(32,no_cls) ----
        h1 = jnp.dot(y, w1_ref[...], preferred_element_type=jnp.float32) + c1_ref[...]
        h2 = jnp.dot(h1, w2_ref[...], preferred_element_type=jnp.float32) + c2_ref[...]
        logits = jnp.dot(h2, w3_ref[...], preferred_element_type=jnp.float32) + c3_ref[...]
        out_ref[...] = logits[0:B_real, :]                              # drop padded rows

    return kernel


@jax.jit
def lstm_encoder_dense_forward(x, params):
    # x: [B, T, input_dim] (batch_first, same as PyTorch)
    B, T, D = x.shape
    num_layers = len(params["lstm"])
    H = params["lstm"][0]["w_hh_t"].shape[0]
    no_cls = params["fc3"][0].shape[1]
    B_pad = max(8, _round_up(B, 8))          # fill all 8 f32 sublanes

    # Layout plumbing only (tiny tensors): batch zero-pad to a full sublane tile,
    # then time-major flatten so each per-step pre-gate block is a contiguous,
    # tile-aligned slice inside the kernel (no VMEM scratch, no strided reads).
    x_tm = jnp.transpose(x, (1, 0, 2))                                  # [T, B, D]
    if B_pad > B:
        x_tm = jnp.pad(x_tm, ((0, 0), (0, B_pad - B), (0, 0)))
    x_tm = x_tm.reshape(T * B_pad, D)

    kernel = make_fused_kernel(T=T, B_real=B, B_pad=B_pad, H=H,
                               num_layers=num_layers)

    inputs = [x_tm]
    for lp in params["lstm"]:
        inputs += [lp["w_ih_t"], lp["w_hh_t"], lp["bias"]]
    inputs += [params["gamma"], params["beta"],
               params["fc1"][0], params["fc1"][1],
               params["fc2"][0], params["fc2"][1],
               params["fc3"][0], params["fc3"][1]]

    vmem = pl.BlockSpec(memory_space=pltpu.MemorySpace.VMEM)
    return pl.pallas_call(
        kernel,
        out_shape=jax.ShapeDtypeStruct((B, no_cls), jnp.float32),
        in_specs=[vmem] * len(inputs),
        out_specs=vmem,
    )(*inputs)


# ---------------------------------------------------------------------------
# Parameter init (deterministic, PyTorch-style uniform bounds)
# ---------------------------------------------------------------------------
def init_params(key, input_dim, latent_dim, num_layers, no_cls):
    params = {"lstm": []}
    k_lstm = 1.0 / np.sqrt(latent_dim)
    for layer in range(num_layers):
        d_in = input_dim if layer == 0 else latent_dim
        key, k1, k2, k3, k4 = jax.random.split(key, 5)
        w_ih = jax.random.uniform(k1, (4 * latent_dim, d_in), jnp.float32, -k_lstm, k_lstm)
        w_hh = jax.random.uniform(k2, (4 * latent_dim, latent_dim), jnp.float32, -k_lstm, k_lstm)
        b_ih = jax.random.uniform(k3, (4 * latent_dim,), jnp.float32, -k_lstm, k_lstm)
        b_hh = jax.random.uniform(k4, (4 * latent_dim,), jnp.float32, -k_lstm, k_lstm)
        params["lstm"].append({
            "w_ih_t": w_ih.T,                       # [D_in, 4H]
            "w_hh_t": w_hh.T,                       # [H, 4H]
            "bias": (b_ih + b_hh)[None, :],         # [1, 4H]
        })

    params["gamma"] = jnp.ones((1, latent_dim), jnp.float32)
    params["beta"] = jnp.zeros((1, latent_dim), jnp.float32)

    def linear(key, d_in, d_out):
        bound = 1.0 / np.sqrt(d_in)
        k_w, k_b = jax.random.split(key)
        w = jax.random.uniform(k_w, (d_in, d_out), jnp.float32, -bound, bound)
        b = jax.random.uniform(k_b, (1, d_out), jnp.float32, -bound, bound)
        return w, b

    key, kf1, kf2, kf3 = jax.random.split(key, 4)
    params["fc1"] = linear(kf1, latent_dim, 64)
    params["fc2"] = linear(kf2, 64, 32)
    params["fc3"] = linear(kf3, 32, no_cls)
    return params


# ---------------------------------------------------------------------------
# Pure-JAX reference
# ---------------------------------------------------------------------------
def reference_forward(x, params):
    x_tm = jnp.transpose(x, (1, 0, 2))
    T, B, _ = x_tm.shape
    seq = x_tm
    for layer_p in params["lstm"]:
        H = layer_p["w_hh_t"].shape[0]
        h = jnp.zeros((B, H), jnp.float32)
        c = jnp.zeros((B, H), jnp.float32)
        outs = []
        for t in range(T):
            gates = seq[t] @ layer_p["w_ih_t"] + h @ layer_p["w_hh_t"] + layer_p["bias"]
            i_g = jax.nn.sigmoid(gates[:, 0 * H:1 * H])
            f_g = jax.nn.sigmoid(gates[:, 1 * H:2 * H])
            g_g = jnp.tanh(gates[:, 2 * H:3 * H])
            o_g = jax.nn.sigmoid(gates[:, 3 * H:4 * H])
            c = f_g * c + i_g * g_g
            h = o_g * jnp.tanh(c)
            outs.append(h)
        seq = jnp.stack(outs, axis=0)
    latent = seq[-1]
    mean = jnp.mean(latent, axis=0, keepdims=True)
    var = jnp.mean((latent - mean) ** 2, axis=0, keepdims=True)
    y = (latent - mean) * lax.rsqrt(var + 1e-5) * params["gamma"] + params["beta"]
    w1, b1 = params["fc1"]
    w2, b2 = params["fc2"]
    w3, b3 = params["fc3"]
    return ((y @ w1 + b1) @ w2 + b2) @ w3 + b3


if __name__ == "__main__":
    B, T, INPUT_DIM = 2, 8, 16
    LATENT_DIM, NUM_LAYERS, NO_CLS = 32, 2, 4

    key = jax.random.PRNGKey(0)
    key, kx, kp = jax.random.split(key, 3)
    x = jax.random.normal(kx, (B, T, INPUT_DIM), jnp.float32)
    params = init_params(kp, INPUT_DIM, LATENT_DIM, NUM_LAYERS, NO_CLS)

    out = lstm_encoder_dense_forward(x, params)
    out = jax.block_until_ready(out)

    ref = jax.block_until_ready(reference_forward(x, params))
    np.testing.assert_allclose(np.asarray(out), np.asarray(ref), rtol=1e-4, atol=1e-5)

    print("KERNEL_OK")
</pallas_src>

<mosaic_0001>
module attributes {stable_mosaic.version = 11 : i64} {
  func.func @kernel(%arg0: memref<64x16xf32, #tpu.memory_space<vmem>>, %arg1: memref<16x128xf32, #tpu.memory_space<vmem>>, %arg2: memref<32x128xf32, #tpu.memory_space<vmem>>, %arg3: memref<1x128xf32, #tpu.memory_space<vmem>>, %arg4: memref<32x128xf32, #tpu.memory_space<vmem>>, %arg5: memref<32x128xf32, #tpu.memory_space<vmem>>, %arg6: memref<1x128xf32, #tpu.memory_space<vmem>>, %arg7: memref<1x32xf32, #tpu.memory_space<vmem>>, %arg8: memref<1x32xf32, #tpu.memory_space<vmem>>, %arg9: memref<32x64xf32, #tpu.memory_space<vmem>>, %arg10: memref<1x64xf32, #tpu.memory_space<vmem>>, %arg11: memref<64x32xf32, #tpu.memory_space<vmem>>, %arg12: memref<1x32xf32, #tpu.memory_space<vmem>>, %arg13: memref<32x4xf32, #tpu.memory_space<vmem>>, %arg14: memref<1x4xf32, #tpu.memory_space<vmem>>, %arg15: memref<2x4xf32, #tpu.memory_space<vmem>>) attributes {dimension_semantics = [], scalar_prefetch = 0 : i64, scratch_operands = 0 : i64, tpu.core_type = #tpu.core_type<tc>} {
    %c0 = arith.constant 0 : index
    %c0_0 = arith.constant 0 : index
    %0 = vector.load %arg0[%c0, %c0_0] : memref<64x16xf32, #tpu.memory_space<vmem>>, vector<64x16xf32>
    %c0_1 = arith.constant 0 : index
    %c0_2 = arith.constant 0 : index
    %1 = vector.load %arg1[%c0_1, %c0_2] : memref<16x128xf32, #tpu.memory_space<vmem>>, vector<16x128xf32>
    %cst = arith.constant dense<0.000000e+00> : vector<64x128xf32>
    %2 = tpu.matmul %0, %1, %cst {dimension_numbers = #tpu.dot_dimension_numbers<[1], [0], [0], [1], [0, 0, 1, 1], [], []>} : vector<64x16xf32>, vector<16x128xf32>, vector<64x128xf32> -> vector<64x128xf32>
    %c0_3 = arith.constant 0 : index
    %c0_4 = arith.constant 0 : index
    %3 = vector.load %arg3[%c0_3, %c0_4] : memref<1x128xf32, #tpu.memory_space<vmem>>, vector<1x128xf32>
    %4 = vector.broadcast %3 : vector<1x128xf32> to vector<64x128xf32>
    %5 = arith.addf %2, %4 : vector<64x128xf32>
    %c0_5 = arith.constant 0 : index
    %c0_6 = arith.constant 0 : index
    %6 = vector.load %arg2[%c0_5, %c0_6] : memref<32x128xf32, #tpu.memory_space<vmem>>, vector<32x128xf32>
    %c0_7 = arith.constant 0 : index
    %c0_8 = arith.constant 0 : index
    %7 = vector.load %arg5[%c0_7, %c0_8] : memref<32x128xf32, #tpu.memory_space<vmem>>, vector<32x128xf32>
    %c0_9 = arith.constant 0 : index
    %c0_10 = arith.constant 0 : index
    %8 = vector.load %arg4[%c0_9, %c0_10] : memref<32x128xf32, #tpu.memory_space<vmem>>, vector<32x128xf32>
    %c0_11 = arith.constant 0 : index
    %c0_12 = arith.constant 0 : index
    %9 = vector.load %arg6[%c0_11, %c0_12] : memref<1x128xf32, #tpu.memory_space<vmem>>, vector<1x128xf32>
    %cst_13 = arith.constant 0.000000e+00 : f32
    %10 = vector.broadcast %cst_13 : f32 to vector<8x32xf32>
    %11 = vector.extract_strided_slice %5 {offsets = [0, 0], sizes = [8, 128], strides = [1, 1]} : vector<64x128xf32> to vector<8x128xf32>
    %cst_14 = arith.constant dense<0.000000e+00> : vector<8x128xf32>
    %12 = tpu.matmul %10, %6, %cst_14 {dimension_numbers = #tpu.dot_dimension_numbers<[1], [0], [0], [1], [0, 0, 1, 1], [], []>} : vector<8x32xf32>, vector<32x128xf32>, vector<8x128xf32> -> vector<8x128xf32>
    %13 = arith.addf %11, %12 : vector<8x128xf32>
    %14 = vector.extract_strided_slice %13 {offsets = [0, 0], sizes = [8, 32], strides = [1, 1]} : vector<8x128xf32> to vector<8x32xf32>
    %15 = arith.negf %14 : vector<8x32xf32>
    %16 = math.exp %15 : vector<8x32xf32>
    %cst_15 = arith.constant 1.000000e+00 : f32
    %17 = vector.broadcast %cst_15 : f32 to vector<8x32xf32>
    %18 = arith.addf %17, %16 : vector<8x32xf32>
    %19 = arith.divf %17, %18 : vector<8x32xf32>
    %20 = vector.extract_strided_slice %13 {offsets = [0, 32], sizes = [8, 32], strides = [1, 1]} : vector<8x128xf32> to vector<8x32xf32>
    %21 = arith.negf %20 : vector<8x32xf32>
    %22 = math.exp %21 : vector<8x32xf32>
    %cst_16 = arith.constant 1.000000e+00 : f32
    %23 = vector.broadcast %cst_16 : f32 to vector<8x32xf32>
    %24 = arith.addf %23, %22 : vector<8x32xf32>
    %25 = arith.divf %23, %24 : vector<8x32xf32>
    %26 = vector.extract_strided_slice %13 {offsets = [0, 64], sizes = [8, 32], strides = [1, 1]} : vector<8x128xf32> to vector<8x32xf32>
    %27 = math.tanh %26 : vector<8x32xf32>
    %28 = vector.extract_strided_slice %13 {offsets = [0, 96], sizes = [8, 32], strides = [1, 1]} : vector<8x128xf32> to vector<8x32xf32>
    %29 = arith.negf %28 : vector<8x32xf32>
    %30 = math.exp %29 : vector<8x32xf32>
    %cst_17 = arith.constant 1.000000e+00 : f32
    %31 = vector.broadcast %cst_17 : f32 to vector<8x32xf32>
    %32 = arith.addf %31, %30 : vector<8x32xf32>
    %33 = arith.divf %31, %32 : vector<8x32xf32>
    %34 = arith.mulf %25, %10 : vector<8x32xf32>
    %35 = arith.mulf %19, %27 : vector<8x32xf32>
    %36 = arith.addf %34, %35 : vector<8x32xf32>
    %37 = math.tanh %36 : vector<8x32xf32>
    %38 = arith.mulf %33, %37 : vector<8x32xf32>
    %cst_18 = arith.constant dense<0.000000e+00> : vector<8x128xf32>
    %39 = tpu.matmul %38, %8, %cst_18 {dimension_numbers = #tpu.dot_dimension_numbers<[1], [0], [0], [1], [0, 0, 1, 1], [], []>} : vector<8x32xf32>, vector<32x128xf32>, vector<8x128xf32> -> vector<8x128xf32>
    %cst_19 = arith.constant dense<0.000000e+00> : vector<8x128xf32>
    %40 = tpu.matmul %10, %7, %cst_19 {dimension_numbers = #tpu.dot_dimension_numbers<[1], [0], [0], [1], [0, 0, 1, 1], [], []>} : vector<8x32xf32>, vector<32x128xf32>, vector<8x128xf32> -> vector<8x128xf32>
    %41 = arith.addf %39, %40 : vector<8x128xf32>
    %42 = vector.broadcast %9 : vector<1x128xf32> to vector<8x128xf32>
    %43 = arith.addf %41, %42 : vector<8x128xf32>
    %44 = vector.extract_strided_slice %43 {offsets = [0, 0], sizes = [8, 32], strides = [1, 1]} : vector<8x128xf32> to vector<8x32xf32>
    %45 = arith.negf %44 : vector<8x32xf32>
    %46 = math.exp %45 : vector<8x32xf32>
    %cst_20 = arith.constant 1.000000e+00 : f32
    %47 = vector.broadcast %cst_20 : f32 to vector<8x32xf32>
    %48 = arith.addf %47, %46 : vector<8x32xf32>
    %49 = arith.divf %47, %48 : vector<8x32xf32>
    %50 = vector.extract_strided_slice %43 {offsets = [0, 32], sizes = [8, 32], strides = [1, 1]} : vector<8x128xf32> to vector<8x32xf32>
    %51 = arith.negf %50 : vector<8x32xf32>
    %52 = math.exp %51 : vector<8x32xf32>
    %cst_21 = arith.constant 1.000000e+00 : f32
    %53 = vector.broadcast %cst_21 : f32 to vector<8x32xf32>
    %54 = arith.addf %53, %52 : vector<8x32xf32>
    %55 = arith.divf %53, %54 : vector<8x32xf32>
    %56 = vector.extract_strided_slice %43 {offsets = [0, 64], sizes = [8, 32], strides = [1, 1]} : vector<8x128xf32> to vector<8x32xf32>
    %57 = math.tanh %56 : vector<8x32xf32>
    %58 = vector.extract_strided_slice %43 {offsets = [0, 96], sizes = [8, 32], strides = [1, 1]} : vector<8x128xf32> to vector<8x32xf32>
    %59 = arith.negf %58 : vector<8x32xf32>
    %60 = math.exp %59 : vector<8x32xf32>
    %cst_22 = arith.constant 1.000000e+00 : f32
    %61 = vector.broadcast %cst_22 : f32 to vector<8x32xf32>
    %62 = arith.addf %61, %60 : vector<8x32xf32>
    %63 = arith.divf %61, %62 : vector<8x32xf32>
    %64 = arith.mulf %55, %10 : vector<8x32xf32>
    %65 = arith.mulf %49, %57 : vector<8x32xf32>
    %66 = arith.addf %64, %65 : vector<8x32xf32>
    %67 = math.tanh %66 : vector<8x32xf32>
    %68 = arith.mulf %63, %67 : vector<8x32xf32>
    %69 = vector.extract_strided_slice %5 {offsets = [8, 0], sizes = [8, 128], strides = [1, 1]} : vector<64x128xf32> to vector<8x128xf32>
    %cst_23 = arith.constant dense<0.000000e+00> : vector<8x128xf32>
    %70 = tpu.matmul %38, %6, %cst_23 {dimension_numbers = #tpu.dot_dimension_numbers<[1], [0], [0], [1], [0, 0, 1, 1], [], []>} : vector<8x32xf32>, vector<32x128xf32>, vector<8x128xf32> -> vector<8x128xf32>
    %71 = arith.addf %69, %70 : vector<8x128xf32>
    %72 = vector.extract_strided_slice %71 {offsets = [0, 0], sizes = [8, 32], strides = [1, 1]} : vector<8x128xf32> to vector<8x32xf32>
    %73 = arith.negf %72 : vector<8x32xf32>
    %74 = math.exp %73 : vector<8x32xf32>
    %cst_24 = arith.constant 1.000000e+00 : f32
    %75 = vector.broadcast %cst_24 : f32 to vector<8x32xf32>
    %76 = arith.addf %75, %74 : vector<8x32xf32>
    %77 = arith.divf %75, %76 : vector<8x32xf32>
    %78 = vector.extract_strided_slice %71 {offsets = [0, 32], sizes = [8, 32], strides = [1, 1]} : vector<8x128xf32> to vector<8x32xf32>
    %79 = arith.negf %78 : vector<8x32xf32>
    %80 = math.exp %79 : vector<8x32xf32>
    %cst_25 = arith.constant 1.000000e+00 : f32
    %81 = vector.broadcast %cst_25 : f32 to vector<8x32xf32>
    %82 = arith.addf %81, %80 : vector<8x32xf32>
    %83 = arith.divf %81, %82 : vector<8x32xf32>
    %84 = vector.extract_strided_slice %71 {offsets = [0, 64], sizes = [8, 32], strides = [1, 1]} : vector<8x128xf32> to vector<8x32xf32>
    %85 = math.tanh %84 : vector<8x32xf32>
    %86 = vector.extract_strided_slice %71 {offsets = [0, 96], sizes = [8, 32], strides = [1, 1]} : vector<8x128xf32> to vector<8x32xf32>
    %87 = arith.negf %86 : vector<8x32xf32>
    %88 = math.exp %87 : vector<8x32xf32>
    %cst_26 = arith.constant 1.000000e+00 : f32
    %89 = vector.broadcast %cst_26 : f32 to vector<8x32xf32>
    %90 = arith.addf %89, %88 : vector<8x32xf32>
    %91 = arith.divf %89, %90 : vector<8x32xf32>
    %92 = arith.mulf %83, %36 : vector<8x32xf32>
    %93 = arith.mulf %77, %85 : vector<8x32xf32>
    %94 = arith.addf %92, %93 : vector<8x32xf32>
    %95 = math.tanh %94 : vector<8x32xf32>
    %96 = arith.mulf %91, %95 : vector<8x32xf32>
    %cst_27 = arith.constant dense<0.000000e+00> : vector<8x128xf32>
    %97 = tpu.matmul %96, %8, %cst_27 {dimension_numbers = #tpu.dot_dimension_numbers<[1], [0], [0], [1], [0, 0, 1, 1], [], []>} : vector<8x32xf32>, vector<32x128xf32>, vector<8x128xf32> -> vector<8x128xf32>
    %cst_28 = arith.constant dense<0.000000e+00> : vector<8x128xf32>
    %98 = tpu.matmul %68, %7, %cst_28 {dimension_numbers = #tpu.dot_dimension_numbers<[1], [0], [0], [1], [0, 0, 1, 1], [], []>} : vector<8x32xf32>, vector<32x128xf32>, vector<8x128xf32> -> vector<8x128xf32>
    %99 = arith.addf %97, %98 : vector<8x128xf32>
    %100 = vector.broadcast %9 : vector<1x128xf32> to vector<8x128xf32>
    %101 = arith.addf %99, %100 : vector<8x128xf32>
    %102 = vector.extract_strided_slice %101 {offsets = [0, 0], sizes = [8, 32], strides = [1, 1]} : vector<8x128xf32> to vector<8x32xf32>
    %103 = arith.negf %102 : vector<8x32xf32>
    %104 = math.exp %103 : vector<8x32xf32>
    %cst_29 = arith.constant 1.000000e+00 : f32
    %105 = vector.broadcast %cst_29 : f32 to vector<8x32xf32>
    %106 = arith.addf %105, %104 : vector<8x32xf32>
    %107 = arith.divf %105, %106 : vector<8x32xf32>
    %108 = vector.extract_strided_slice %101 {offsets = [0, 32], sizes = [8, 32], strides = [1, 1]} : vector<8x128xf32> to vector<8x32xf32>
    %109 = arith.negf %108 : vector<8x32xf32>
    %110 = math.exp %109 : vector<8x32xf32>
    %cst_30 = arith.constant 1.000000e+00 : f32
    %111 = vector.broadcast %cst_30 : f32 to vector<8x32xf32>
    %112 = arith.addf %111, %110 : vector<8x32xf32>
    %113 = arith.divf %111, %112 : vector<8x32xf32>
    %114 = vector.extract_strided_slice %101 {offsets = [0, 64], sizes = [8, 32], strides = [1, 1]} : vector<8x128xf32> to vector<8x32xf32>
    %115 = math.tanh %114 : vector<8x32xf32>
    %116 = vector.extract_strided_slice %101 {offsets = [0, 96], sizes = [8, 32], strides = [1, 1]} : vector<8x128xf32> to vector<8x32xf32>
    %117 = arith.negf %116 : vector<8x32xf32>
    %118 = math.exp %117 : vector<8x32xf32>
    %cst_31 = arith.constant 1.000000e+00 : f32
    %119 = vector.broadcast %cst_31 : f32 to vector<8x32xf32>
    %120 = arith.addf %119, %118 : vector<8x32xf32>
    %121 = arith.divf %119, %120 : vector<8x32xf32>
    %122 = arith.mulf %113, %66 : vector<8x32xf32>
    %123 = arith.mulf %107, %115 : vector<8x32xf32>
    %124 = arith.addf %122, %123 : vector<8x32xf32>
    %125 = math.tanh %124 : vector<8x32xf32>
    %126 = arith.mulf %121, %125 : vector<8x32xf32>
    %127 = vector.extract_strided_slice %5 {offsets = [16, 0], sizes = [8, 128], strides = [1, 1]} : vector<64x128xf32> to vector<8x128xf32>
    %cst_32 = arith.constant dense<0.000000e+00> : vector<8x128xf32>
    %128 = tpu.matmul %96, %6, %cst_32 {dimension_numbers = #tpu.dot_dimension_numbers<[1], [0], [0], [1], [0, 0, 1, 1], [], []>} : vector<8x32xf32>, vector<32x128xf32>, vector<8x128xf32> -> vector<8x128xf32>
    %129 = arith.addf %127, %128 : vector<8x128xf32>
    %130 = vector.extract_strided_slice %129 {offsets = [0, 0], sizes = [8, 32], strides = [1, 1]} : vector<8x128xf32> to vector<8x32xf32>
    %131 = arith.negf %130 : vector<8x32xf32>
    %132 = math.exp %131 : vector<8x32xf32>
    %cst_33 = arith.constant 1.000000e+00 : f32
    %133 = vector.broadcast %cst_33 : f32 to vector<8x32xf32>
    %134 = arith.addf %133, %132 : vector<8x32xf32>
    %135 = arith.divf %133, %134 : vector<8x32xf32>
    %136 = vector.extract_strided_slice %129 {offsets = [0, 32], sizes = [8, 32], strides = [1, 1]} : vector<8x128xf32> to vector<8x32xf32>
    %137 = arith.negf %136 : vector<8x32xf32>
    %138 = math.exp %137 : vector<8x32xf32>
    %cst_34 = arith.constant 1.000000e+00 : f32
    %139 = vector.broadcast %cst_34 : f32 to vector<8x32xf32>
    %140 = arith.addf %139, %138 : vector<8x32xf32>
    %141 = arith.divf %139, %140 : vector<8x32xf32>
    %142 = vector.extract_strided_slice %129 {offsets = [0, 64], sizes = [8, 32], strides = [1, 1]} : vector<8x128xf32> to vector<8x32xf32>
    %143 = math.tanh %142 : vector<8x32xf32>
    %144 = vector.extract_strided_slice %129 {offsets = [0, 96], sizes = [8, 32], strides = [1, 1]} : vector<8x128xf32> to vector<8x32xf32>
    %145 = arith.negf %144 : vector<8x32xf32>
    %146 = math.exp %145 : vector<8x32xf32>
    %cst_35 = arith.constant 1.000000e+00 : f32
    %147 = vector.broadcast %cst_35 : f32 to vector<8x32xf32>
    %148 = arith.addf %147, %146 : vector<8x32xf32>
    %149 = arith.divf %147, %148 : vector<8x32xf32>
    %150 = arith.mulf %141, %94 : vector<8x32xf32>
    %151 = arith.mulf %135, %143 : vector<8x32xf32>
    %152 = arith.addf %150, %151 : vector<8x32xf32>
    %153 = math.tanh %152 : vector<8x32xf32>
    %154 = arith.mulf %149, %153 : vector<8x32xf32>
    %cst_36 = arith.constant dense<0.000000e+00> : vector<8x128xf32>
    %155 = tpu.matmul %154, %8, %cst_36 {dimension_numbers = #tpu.dot_dimension_numbers<[1], [0], [0], [1], [0, 0, 1, 1], [], []>} : vector<8x32xf32>, vector<32x128xf32>, vector<8x128xf32> -> vector<8x128xf32>
    %cst_37 = arith.constant dense<0.000000e+00> : vector<8x128xf32>
    %156 = tpu.matmul %126, %7, %cst_37 {dimension_numbers = #tpu.dot_dimension_numbers<[1], [0], [0], [1], [0, 0, 1, 1], [], []>} : vector<8x32xf32>, vector<32x128xf32>, vector<8x128xf32> -> vector<8x128xf32>
    %157 = arith.addf %155, %156 : vector<8x128xf32>
    %158 = vector.broadcast %9 : vector<1x128xf32> to vector<8x128xf32>
    %159 = arith.addf %157, %158 : vector<8x128xf32>
    %160 = vector.extract_strided_slice %159 {offsets = [0, 0], sizes = [8, 32], strides = [1, 1]} : vector<8x128xf32> to vector<8x32xf32>
    %161 = arith.negf %160 : vector<8x32xf32>
    %162 = math.exp %161 : vector<8x32xf32>
    %cst_38 = arith.constant 1.000000e+00 : f32
    %163 = vector.broadcast %cst_38 : f32 to vector<8x32xf32>
    %164 = arith.addf %163, %162 : vector<8x32xf32>
    %165 = arith.divf %163, %164 : vector<8x32xf32>
    %166 = vector.extract_strided_slice %159 {offsets = [0, 32], sizes = [8, 32], strides = [1, 1]} : vector<8x128xf32> to vector<8x32xf32>
    %167 = arith.negf %166 : vector<8x32xf32>
    %168 = math.exp %167 : vector<8x32xf32>
    %cst_39 = arith.constant 1.000000e+00 : f32
    %169 = vector.broadcast %cst_39 : f32 to vector<8x32xf32>
    %170 = arith.addf %169, %168 : vector<8x32xf32>
    %171 = arith.divf %169, %170 : vector<8x32xf32>
    %172 = vector.extract_strided_slice %159 {offsets = [0, 64], sizes = [8, 32], strides = [1, 1]} : vector<8x128xf32> to vector<8x32xf32>
    %173 = math.tanh %172 : vector<8x32xf32>
    %174 = vector.extract_strided_slice %159 {offsets = [0, 96], sizes = [8, 32], strides = [1, 1]} : vector<8x128xf32> to vector<8x32xf32>
    %175 = arith.negf %174 : vector<8x32xf32>
    %176 = math.exp %175 : vector<8x32xf32>
    %cst_40 = arith.constant 1.000000e+00 : f32
    %177 = vector.broadcast %cst_40 : f32 to vector<8x32xf32>
    %178 = arith.addf %177, %176 : vector<8x32xf32>
    %179 = arith.divf %177, %178 : vector<8x32xf32>
    %180 = arith.mulf %171, %124 : vector<8x32xf32>
    %181 = arith.mulf %165, %173 : vector<8x32xf32>
    %182 = arith.addf %180, %181 : vector<8x32xf32>
    %183 = math.tanh %182 : vector<8x32xf32>
    %184 = arith.mulf %179, %183 : vector<8x32xf32>
    %185 = vector.extract_strided_slice %5 {offsets = [24, 0], sizes = [8, 128], strides = [1, 1]} : vector<64x128xf32> to vector<8x128xf32>
    %cst_41 = arith.constant dense<0.000000e+00> : vector<8x128xf32>
    %186 = tpu.matmul %154, %6, %cst_41 {dimension_numbers = #tpu.dot_dimension_numbers<[1], [0], [0], [1], [0, 0, 1, 1], [], []>} : vector<8x32xf32>, vector<32x128xf32>, vector<8x128xf32> -> vector<8x128xf32>
    %187 = arith.addf %185, %186 : vector<8x128xf32>
    %188 = vector.extract_strided_slice %187 {offsets = [0, 0], sizes = [8, 32], strides = [1, 1]} : vector<8x128xf32> to vector<8x32xf32>
    %189 = arith.negf %188 : vector<8x32xf32>
    %190 = math.exp %189 : vector<8x32xf32>
    %cst_42 = arith.constant 1.000000e+00 : f32
    %191 = vector.broadcast %cst_42 : f32 to vector<8x32xf32>
    %192 = arith.addf %191, %190 : vector<8x32xf32>
    %193 = arith.divf %191, %192 : vector<8x32xf32>
    %194 = vector.extract_strided_slice %187 {offsets = [0, 32], sizes = [8, 32], strides = [1, 1]} : vector<8x128xf32> to vector<8x32xf32>
    %195 = arith.negf %194 : vector<8x32xf32>
    %196 = math.exp %195 : vector<8x32xf32>
    %cst_43 = arith.constant 1.000000e+00 : f32
    %197 = vector.broadcast %cst_43 : f32 to vector<8x32xf32>
    %198 = arith.addf %197, %196 : vector<8x32xf32>
    %199 = arith.divf %197, %198 : vector<8x32xf32>
    %200 = vector.extract_strided_slice %187 {offsets = [0, 64], sizes = [8, 32], strides = [1, 1]} : vector<8x128xf32> to vector<8x32xf32>
    %201 = math.tanh %200 : vector<8x32xf32>
    %202 = vector.extract_strided_slice %187 {offsets = [0, 96], sizes = [8, 32], strides = [1, 1]} : vector<8x128xf32> to vector<8x32xf32>
    %203 = arith.negf %202 : vector<8x32xf32>
    %204 = math.exp %203 : vector<8x32xf32>
    %cst_44 = arith.constant 1.000000e+00 : f32
    %205 = vector.broadcast %cst_44 : f32 to vector<8x32xf32>
    %206 = arith.addf %205, %204 : vector<8x32xf32>
    %207 = arith.divf %205, %206 : vector<8x32xf32>
    %208 = arith.mulf %199, %152 : vector<8x32xf32>
    %209 = arith.mulf %193, %201 : vector<8x32xf32>
    %210 = arith.addf %208, %209 : vector<8x32xf32>
    %211 = math.tanh %210 : vector<8x32xf32>
    %212 = arith.mulf %207, %211 : vector<8x32xf32>
    %cst_45 = arith.constant dense<0.000000e+00> : vector<8x128xf32>
    %213 = tpu.matmul %212, %8, %cst_45 {dimension_numbers = #tpu.dot_dimension_numbers<[1], [0], [0], [1], [0, 0, 1, 1], [], []>} : vector<8x32xf32>, vector<32x128xf32>, vector<8x128xf32> -> vector<8x128xf32>
    %cst_46 = arith.constant dense<0.000000e+00> : vector<8x128xf32>
    %214 = tpu.matmul %184, %7, %cst_46 {dimension_numbers = #tpu.dot_dimension_numbers<[1], [0], [0], [1], [0, 0, 1, 1], [], []>} : vector<8x32xf32>, vector<32x128xf32>, vector<8x128xf32> -> vector<8x128xf32>
    %215 = arith.addf %213, %214 : vector<8x128xf32>
    %216 = vector.broadcast %9 : vector<1x128xf32> to vector<8x128xf32>
    %217 = arith.addf %215, %216 : vector<8x128xf32>
    %218 = vector.extract_strided_slice %217 {offsets = [0, 0], sizes = [8, 32], strides = [1, 1]} : vector<8x128xf32> to vector<8x32xf32>
    %219 = arith.negf %218 : vector<8x32xf32>
    %220 = math.exp %219 : vector<8x32xf32>
    %cst_47 = arith.constant 1.000000e+00 : f32
    %221 = vector.broadcast %cst_47 : f32 to vector<8x32xf32>
    %222 = arith.addf %221, %220 : vector<8x32xf32>
    %223 = arith.divf %221, %222 : vector<8x32xf32>
    %224 = vector.extract_strided_slice %217 {offsets = [0, 32], sizes = [8, 32], strides = [1, 1]} : vector<8x128xf32> to vector<8x32xf32>
    %225 = arith.negf %224 : vector<8x32xf32>
    %226 = math.exp %225 : vector<8x32xf32>
    %cst_48 = arith.constant 1.000000e+00 : f32
    %227 = vector.broadcast %cst_48 : f32 to vector<8x32xf32>
    %228 = arith.addf %227, %226 : vector<8x32xf32>
    %229 = arith.divf %227, %228 : vector<8x32xf32>
    %230 = vector.extract_strided_slice %217 {offsets = [0, 64], sizes = [8, 32], strides = [1, 1]} : vector<8x128xf32> to vector<8x32xf32>
    %231 = math.tanh %230 : vector<8x32xf32>
    %232 = vector.extract_strided_slice %217 {offsets = [0, 96], sizes = [8, 32], strides = [1, 1]} : vector<8x128xf32> to vector<8x32xf32>
    %233 = arith.negf %232 : vector<8x32xf32>
    %234 = math.exp %233 : vector<8x32xf32>
    %cst_49 = arith.constant 1.000000e+00 : f32
    %235 = vector.broadcast %cst_49 : f32 to vector<8x32xf32>
    %236 = arith.addf %235, %234 : vector<8x32xf32>
    %237 = arith.divf %235, %236 : vector<8x32xf32>
    %238 = arith.mulf %229, %182 : vector<8x32xf32>
    %239 = arith.mulf %223, %231 : vector<8x32xf32>
    %240 = arith.addf %238, %239 : vector<8x32xf32>
    %241 = math.tanh %240 : vector<8x32xf32>
    %242 = arith.mulf %237, %241 : vector<8x32xf32>
    %243 = vector.extract_strided_slice %5 {offsets = [32, 0], sizes = [8, 128], strides = [1, 1]} : vector<64x128xf32> to vector<8x128xf32>
    %cst_50 = arith.constant dense<0.000000e+00> : vector<8x128xf32>
    %244 = tpu.matmul %212, %6, %cst_50 {dimension_numbers = #tpu.dot_dimension_numbers<[1], [0], [0], [1], [0, 0, 1, 1], [], []>} : vector<8x32xf32>, vector<32x128xf32>, vector<8x128xf32> -> vector<8x128xf32>
    %245 = arith.addf %243, %244 : vector<8x128xf32>
    %246 = vector.extract_strided_slice %245 {offsets = [0, 0], sizes = [8, 32], strides = [1, 1]} : vector<8x128xf32> to vector<8x32xf32>
    %247 = arith.negf %246 : vector<8x32xf32>
    %248 = math.exp %247 : vector<8x32xf32>
    %cst_51 = arith.constant 1.000000e+00 : f32
    %249 = vector.broadcast %cst_51 : f32 to vector<8x32xf32>
    %250 = arith.addf %249, %248 : vector<8x32xf32>
    %251 = arith.divf %249, %250 : vector<8x32xf32>
    %252 = vector.extract_strided_slice %245 {offsets = [0, 32], sizes = [8, 32], strides = [1, 1]} : vector<8x128xf32> to vector<8x32xf32>
    %253 = arith.negf %252 : vector<8x32xf32>
    %254 = math.exp %253 : vector<8x32xf32>
    %cst_52 = arith.constant 1.000000e+00 : f32
    %255 = vector.broadcast %cst_52 : f32 to vector<8x32xf32>
    %256 = arith.addf %255, %254 : vector<8x32xf32>
    %257 = arith.divf %255, %256 : vector<8x32xf32>
    %258 = vector.extract_strided_slice %245 {offsets = [0, 64], sizes = [8, 32], strides = [1, 1]} : vector<8x128xf32> to vector<8x32xf32>
    %259 = math.tanh %258 : vector<8x32xf32>
    %260 = vector.extract_strided_slice %245 {offsets = [0, 96], sizes = [8, 32], strides = [1, 1]} : vector<8x128xf32> to vector<8x32xf32>
    %261 = arith.negf %260 : vector<8x32xf32>
    %262 = math.exp %261 : vector<8x32xf32>
    %cst_53 = arith.constant 1.000000e+00 : f32
    %263 = vector.broadcast %cst_53 : f32 to vector<8x32xf32>
    %264 = arith.addf %263, %262 : vector<8x32xf32>
    %265 = arith.divf %263, %264 : vector<8x32xf32>
    %266 = arith.mulf %257, %210 : vector<8x32xf32>
    %267 = arith.mulf %251, %259 : vector<8x32xf32>
    %268 = arith.addf %266, %267 : vector<8x32xf32>
    %269 = math.tanh %268 : vector<8x32xf32>
    %270 = arith.mulf %265, %269 : vector<8x32xf32>
    %cst_54 = arith.constant dense<0.000000e+00> : vector<8x128xf32>
    %271 = tpu.matmul %270, %8, %cst_54 {dimension_numbers = #tpu.dot_dimension_numbers<[1], [0], [0], [1], [0, 0, 1, 1], [], []>} : vector<8x32xf32>, vector<32x128xf32>, vector<8x128xf32> -> vector<8x128xf32>
    %cst_55 = arith.constant dense<0.000000e+00> : vector<8x128xf32>
    %272 = tpu.matmul %242, %7, %cst_55 {dimension_numbers = #tpu.dot_dimension_numbers<[1], [0], [0], [1], [0, 0, 1, 1], [], []>} : vector<8x32xf32>, vector<32x128xf32>, vector<8x128xf32> -> vector<8x128xf32>
    %273 = arith.addf %271, %272 : vector<8x128xf32>
    %274 = vector.broadcast %9 : vector<1x128xf32> to vector<8x128xf32>
    %275 = arith.addf %273, %274 : vector<8x128xf32>
    %276 = vector.extract_strided_slice %275 {offsets = [0, 0], sizes = [8, 32], strides = [1, 1]} : vector<8x128xf32> to vector<8x32xf32>
    %277 = arith.negf %276 : vector<8x32xf32>
    %278 = math.exp %277 : vector<8x32xf32>
    %cst_56 = arith.constant 1.000000e+00 : f32
    %279 = vector.broadcast %cst_56 : f32 to vector<8x32xf32>
    %280 = arith.addf %279, %278 : vector<8x32xf32>
    %281 = arith.divf %279, %280 : vector<8x32xf32>
    %282 = vector.extract_strided_slice %275 {offsets = [0, 32], sizes = [8, 32], strides = [1, 1]} : vector<8x128xf32> to vector<8x32xf32>
    %283 = arith.negf %282 : vector<8x32xf32>
    %284 = math.exp %283 : vector<8x32xf32>
    %cst_57 = arith.constant 1.000000e+00 : f32
    %285 = vector.broadcast %cst_57 : f32 to vector<8x32xf32>
    %286 = arith.addf %285, %284 : vector<8x32xf32>
    %287 = arith.divf %285, %286 : vector<8x32xf32>
    %288 = vector.extract_strided_slice %275 {offsets = [0, 64], sizes = [8, 32], strides = [1, 1]} : vector<8x128xf32> to vector<8x32xf32>
    %289 = math.tanh %288 : vector<8x32xf32>
    %290 = vector.extract_strided_slice %275 {offsets = [0, 96], sizes = [8, 32], strides = [1, 1]} : vector<8x128xf32> to vector<8x32xf32>
    %291 = arith.negf %290 : vector<8x32xf32>
    %292 = math.exp %291 : vector<8x32xf32>
    %cst_58 = arith.constant 1.000000e+00 : f32
    %293 = vector.broadcast %cst_58 : f32 to vector<8x32xf32>
    %294 = arith.addf %293, %292 : vector<8x32xf32>
    %295 = arith.divf %293, %294 : vector<8x32xf32>
    %296 = arith.mulf %287, %240 : vector<8x32xf32>
    %297 = arith.mulf %281, %289 : vector<8x32xf32>
    %298 = arith.addf %296, %297 : vector<8x32xf32>
    %299 = math.tanh %298 : vector<8x32xf32>
    %300 = arith.mulf %295, %299 : vector<8x32xf32>
    %301 = vector.extract_strided_slice %5 {offsets = [40, 0], sizes = [8, 128], strides = [1, 1]} : vector<64x128xf32> to vector<8x128xf32>
    %cst_59 = arith.constant dense<0.000000e+00> : vector<8x128xf32>
    %302 = tpu.matmul %270, %6, %cst_59 {dimension_numbers = #tpu.dot_dimension_numbers<[1], [0], [0], [1], [0, 0, 1, 1], [], []>} : vector<8x32xf32>, vector<32x128xf32>, vector<8x128xf32> -> vector<8x128xf32>
    %303 = arith.addf %301, %302 : vector<8x128xf32>
    %304 = vector.extract_strided_slice %303 {offsets = [0, 0], sizes = [8, 32], strides = [1, 1]} : vector<8x128xf32> to vector<8x32xf32>
    %305 = arith.negf %304 : vector<8x32xf32>
    %306 = math.exp %305 : vector<8x32xf32>
    %cst_60 = arith.constant 1.000000e+00 : f32
    %307 = vector.broadcast %cst_60 : f32 to vector<8x32xf32>
    %308 = arith.addf %307, %306 : vector<8x32xf32>
    %309 = arith.divf %307, %308 : vector<8x32xf32>
    %310 = vector.extract_strided_slice %303 {offsets = [0, 32], sizes = [8, 32], strides = [1, 1]} : vector<8x128xf32> to vector<8x32xf32>
    %311 = arith.negf %310 : vector<8x32xf32>
    %312 = math.exp %311 : vector<8x32xf32>
    %cst_61 = arith.constant 1.000000e+00 : f32
    %313 = vector.broadcast %cst_61 : f32 to vector<8x32xf32>
    %314 = arith.addf %313, %312 : vector<8x32xf32>
    %315 = arith.divf %313, %314 : vector<8x32xf32>
    %316 = vector.extract_strided_slice %303 {offsets = [0, 64], sizes = [8, 32], strides = [1, 1]} : vector<8x128xf32> to vector<8x32xf32>
    %317 = math.tanh %316 : vector<8x32xf32>
    %318 = vector.extract_strided_slice %303 {offsets = [0, 96], sizes = [8, 32], strides = [1, 1]} : vector<8x128xf32> to vector<8x32xf32>
    %319 = arith.negf %318 : vector<8x32xf32>
    %320 = math.exp %319 : vector<8x32xf32>
    %cst_62 = arith.constant 1.000000e+00 : f32
    %321 = vector.broadcast %cst_62 : f32 to vector<8x32xf32>
    %322 = arith.addf %321, %320 : vector<8x32xf32>
    %323 = arith.divf %321, %322 : vector<8x32xf32>
    %324 = arith.mulf %315, %268 : vector<8x32xf32>
    %325 = arith.mulf %309, %317 : vector<8x32xf32>
    %326 = arith.addf %324, %325 : vector<8x32xf32>
    %327 = math.tanh %326 : vector<8x32xf32>
    %328 = arith.mulf %323, %327 : vector<8x32xf32>
    %cst_63 = arith.constant dense<0.000000e+00> : vector<8x128xf32>
    %329 = tpu.matmul %328, %8, %cst_63 {dimension_numbers = #tpu.dot_dimension_numbers<[1], [0], [0], [1], [0, 0, 1, 1], [], []>} : vector<8x32xf32>, vector<32x128xf32>, vector<8x128xf32> -> vector<8x128xf32>
    %cst_64 = arith.constant dense<0.000000e+00> : vector<8x128xf32>
    %330 = tpu.matmul %300, %7, %cst_64 {dimension_numbers = #tpu.dot_dimension_numbers<[1], [0], [0], [1], [0, 0, 1, 1], [], []>} : vector<8x32xf32>, vector<32x128xf32>, vector<8x128xf32> -> vector<8x128xf32>
    %331 = arith.addf %329, %330 : vector<8x128xf32>
    %332 = vector.broadcast %9 : vector<1x128xf32> to vector<8x128xf32>
    %333 = arith.addf %331, %332 : vector<8x128xf32>
    %334 = vector.extract_strided_slice %333 {offsets = [0, 0], sizes = [8, 32], strides = [1, 1]} : vector<8x128xf32> to vector<8x32xf32>
    %335 = arith.negf %334 : vector<8x32xf32>
    %336 = math.exp %335 : vector<8x32xf32>
    %cst_65 = arith.constant 1.000000e+00 : f32
    %337 = vector.broadcast %cst_65 : f32 to vector<8x32xf32>
    %338 = arith.addf %337, %336 : vector<8x32xf32>
    %339 = arith.divf %337, %338 : vector<8x32xf32>
    %340 = vector.extract_strided_slice %333 {offsets = [0, 32], sizes = [8, 32], strides = [1, 1]} : vector<8x128xf32> to vector<8x32xf32>
    %341 = arith.negf %340 : vector<8x32xf32>
    %342 = math.exp %341 : vector<8x32xf32>
    %cst_66 = arith.constant 1.000000e+00 : f32
    %343 = vector.broadcast %cst_66 : f32 to vector<8x32xf32>
    %344 = arith.addf %343, %342 : vector<8x32xf32>
    %345 = arith.divf %343, %344 : vector<8x32xf32>
    %346 = vector.extract_strided_slice %333 {offsets = [0, 64], sizes = [8, 32], strides = [1, 1]} : vector<8x128xf32> to vector<8x32xf32>
    %347 = math.tanh %346 : vector<8x32xf32>
    %348 = vector.extract_strided_slice %333 {offsets = [0, 96], sizes = [8, 32], strides = [1, 1]} : vector<8x128xf32> to vector<8x32xf32>
    %349 = arith.negf %348 : vector<8x32xf32>
    %350 = math.exp %349 : vector<8x32xf32>
    %cst_67 = arith.constant 1.000000e+00 : f32
    %351 = vector.broadcast %cst_67 : f32 to vector<8x32xf32>
    %352 = arith.addf %351, %350 : vector<8x32xf32>
    %353 = arith.divf %351, %352 : vector<8x32xf32>
    %354 = arith.mulf %345, %298 : vector<8x32xf32>
    %355 = arith.mulf %339, %347 : vector<8x32xf32>
    %356 = arith.addf %354, %355 : vector<8x32xf32>
    %357 = math.tanh %356 : vector<8x32xf32>
    %358 = arith.mulf %353, %357 : vector<8x32xf32>
    %359 = vector.extract_strided_slice %5 {offsets = [48, 0], sizes = [8, 128], strides = [1, 1]} : vector<64x128xf32> to vector<8x128xf32>
    %cst_68 = arith.constant dense<0.000000e+00> : vector<8x128xf32>
    %360 = tpu.matmul %328, %6, %cst_68 {dimension_numbers = #tpu.dot_dimension_numbers<[1], [0], [0], [1], [0, 0, 1, 1], [], []>} : vector<8x32xf32>, vector<32x128xf32>, vector<8x128xf32> -> vector<8x128xf32>
    %361 = arith.addf %359, %360 : vector<8x128xf32>
    %362 = vector.extract_strided_slice %361 {offsets = [0, 0], sizes = [8, 32], strides = [1, 1]} : vector<8x128xf32> to vector<8x32xf32>
    %363 = arith.negf %362 : vector<8x32xf32>
    %364 = math.exp %363 : vector<8x32xf32>
    %cst_69 = arith.constant 1.000000e+00 : f32
    %365 = vector.broadcast %cst_69 : f32 to vector<8x32xf32>
    %366 = arith.addf %365, %364 : vector<8x32xf32>
    %367 = arith.divf %365, %366 : vector<8x32xf32>
    %368 = vector.extract_strided_slice %361 {offsets = [0, 32], sizes = [8, 32], strides = [1, 1]} : vector<8x128xf32> to vector<8x32xf32>
    %369 = arith.negf %368 : vector<8x32xf32>
    %370 = math.exp %369 : vector<8x32xf32>
    %cst_70 = arith.constant 1.000000e+00 : f32
    %371 = vector.broadcast %cst_70 : f32 to vector<8x32xf32>
    %372 = arith.addf %371, %370 : vector<8x32xf32>
    %373 = arith.divf %371, %372 : vector<8x32xf32>
    %374 = vector.extract_strided_slice %361 {offsets = [0, 64], sizes = [8, 32], strides = [1, 1]} : vector<8x128xf32> to vector<8x32xf32>
    %375 = math.tanh %374 : vector<8x32xf32>
    %376 = vector.extract_strided_slice %361 {offsets = [0, 96], sizes = [8, 32], strides = [1, 1]} : vector<8x128xf32> to vector<8x32xf32>
    %377 = arith.negf %376 : vector<8x32xf32>
    %378 = math.exp %377 : vector<8x32xf32>
    %cst_71 = arith.constant 1.000000e+00 : f32
    %379 = vector.broadcast %cst_71 : f32 to vector<8x32xf32>
    %380 = arith.addf %379, %378 : vector<8x32xf32>
    %381 = arith.divf %379, %380 : vector<8x32xf32>
    %382 = arith.mulf %373, %326 : vector<8x32xf32>
    %383 = arith.mulf %367, %375 : vector<8x32xf32>
    %384 = arith.addf %382, %383 : vector<8x32xf32>
    %385 = math.tanh %384 : vector<8x32xf32>
    %386 = arith.mulf %381, %385 : vector<8x32xf32>
    %cst_72 = arith.constant dense<0.000000e+00> : vector<8x128xf32>
    %387 = tpu.matmul %386, %8, %cst_72 {dimension_numbers = #tpu.dot_dimension_numbers<[1], [0], [0], [1], [0, 0, 1, 1], [], []>} : vector<8x32xf32>, vector<32x128xf32>, vector<8x128xf32> -> vector<8x128xf32>
    %cst_73 = arith.constant dense<0.000000e+00> : vector<8x128xf32>
    %388 = tpu.matmul %358, %7, %cst_73 {dimension_numbers = #tpu.dot_dimension_numbers<[1], [0], [0], [1], [0, 0, 1, 1], [], []>} : vector<8x32xf32>, vector<32x128xf32>, vector<8x128xf32> -> vector<8x128xf32>
    %389 = arith.addf %387, %388 : vector<8x128xf32>
    %390 = vector.broadcast %9 : vector<1x128xf32> to vector<8x128xf32>
    %391 = arith.addf %389, %390 : vector<8x128xf32>
    %392 = vector.extract_strided_slice %391 {offsets = [0, 0], sizes = [8, 32], strides = [1, 1]} : vector<8x128xf32> to vector<8x32xf32>
    %393 = arith.negf %392 : vector<8x32xf32>
    %394 = math.exp %393 : vector<8x32xf32>
    %cst_74 = arith.constant 1.000000e+00 : f32
    %395 = vector.broadcast %cst_74 : f32 to vector<8x32xf32>
    %396 = arith.addf %395, %394 : vector<8x32xf32>
    %397 = arith.divf %395, %396 : vector<8x32xf32>
    %398 = vector.extract_strided_slice %391 {offsets = [0, 32], sizes = [8, 32], strides = [1, 1]} : vector<8x128xf32> to vector<8x32xf32>
    %399 = arith.negf %398 : vector<8x32xf32>
    %400 = math.exp %399 : vector<8x32xf32>
    %cst_75 = arith.constant 1.000000e+00 : f32
    %401 = vector.broadcast %cst_75 : f32 to vector<8x32xf32>
    %402 = arith.addf %401, %400 : vector<8x32xf32>
    %403 = arith.divf %401, %402 : vector<8x32xf32>
    %404 = vector.extract_strided_slice %391 {offsets = [0, 64], sizes = [8, 32], strides = [1, 1]} : vector<8x128xf32> to vector<8x32xf32>
    %405 = math.tanh %404 : vector<8x32xf32>
    %406 = vector.extract_strided_slice %391 {offsets = [0, 96], sizes = [8, 32], strides = [1, 1]} : vector<8x128xf32> to vector<8x32xf32>
    %407 = arith.negf %406 : vector<8x32xf32>
    %408 = math.exp %407 : vector<8x32xf32>
    %cst_76 = arith.constant 1.000000e+00 : f32
    %409 = vector.broadcast %cst_76 : f32 to vector<8x32xf32>
    %410 = arith.addf %409, %408 : vector<8x32xf32>
    %411 = arith.divf %409, %410 : vector<8x32xf32>
    %412 = arith.mulf %403, %356 : vector<8x32xf32>
    %413 = arith.mulf %397, %405 : vector<8x32xf32>
    %414 = arith.addf %412, %413 : vector<8x32xf32>
    %415 = math.tanh %414 : vector<8x32xf32>
    %416 = arith.mulf %411, %415 : vector<8x32xf32>
    %417 = vector.extract_strided_slice %5 {offsets = [56, 0], sizes = [8, 128], strides = [1, 1]} : vector<64x128xf32> to vector<8x128xf32>
    %cst_77 = arith.constant dense<0.000000e+00> : vector<8x128xf32>
    %418 = tpu.matmul %386, %6, %cst_77 {dimension_numbers = #tpu.dot_dimension_numbers<[1], [0], [0], [1], [0, 0, 1, 1], [], []>} : vector<8x32xf32>, vector<32x128xf32>, vector<8x128xf32> -> vector<8x128xf32>
    %419 = arith.addf %417, %418 : vector<8x128xf32>
    %420 = vector.extract_strided_slice %419 {offsets = [0, 0], sizes = [8, 32], strides = [1, 1]} : vector<8x128xf32> to vector<8x32xf32>
    %421 = arith.negf %420 : vector<8x32xf32>
    %422 = math.exp %421 : vector<8x32xf32>
    %cst_78 = arith.constant 1.000000e+00 : f32
    %423 = vector.broadcast %cst_78 : f32 to vector<8x32xf32>
    %424 = arith.addf %423, %422 : vector<8x32xf32>
    %425 = arith.divf %423, %424 : vector<8x32xf32>
    %426 = vector.extract_strided_slice %419 {offsets = [0, 32], sizes = [8, 32], strides = [1, 1]} : vector<8x128xf32> to vector<8x32xf32>
    %427 = arith.negf %426 : vector<8x32xf32>
    %428 = math.exp %427 : vector<8x32xf32>
    %cst_79 = arith.constant 1.000000e+00 : f32
    %429 = vector.broadcast %cst_79 : f32 to vector<8x32xf32>
    %430 = arith.addf %429, %428 : vector<8x32xf32>
    %431 = arith.divf %429, %430 : vector<8x32xf32>
    %432 = vector.extract_strided_slice %419 {offsets = [0, 64], sizes = [8, 32], strides = [1, 1]} : vector<8x128xf32> to vector<8x32xf32>
    %433 = math.tanh %432 : vector<8x32xf32>
    %434 = vector.extract_strided_slice %419 {offsets = [0, 96], sizes = [8, 32], strides = [1, 1]} : vector<8x128xf32> to vector<8x32xf32>
    %435 = arith.negf %434 : vector<8x32xf32>
    %436 = math.exp %435 : vector<8x32xf32>
    %cst_80 = arith.constant 1.000000e+00 : f32
    %437 = vector.broadcast %cst_80 : f32 to vector<8x32xf32>
    %438 = arith.addf %437, %436 : vector<8x32xf32>
    %439 = arith.divf %437, %438 : vector<8x32xf32>
    %440 = arith.mulf %431, %384 : vector<8x32xf32>
    %441 = arith.mulf %425, %433 : vector<8x32xf32>
    %442 = arith.addf %440, %441 : vector<8x32xf32>
    %443 = math.tanh %442 : vector<8x32xf32>
    %444 = arith.mulf %439, %443 : vector<8x32xf32>
    %cst_81 = arith.constant dense<0.000000e+00> : vector<8x128xf32>
    %445 = tpu.matmul %444, %8, %cst_81 {dimension_numbers = #tpu.dot_dimension_numbers<[1], [0], [0], [1], [0, 0, 1, 1], [], []>} : vector<8x32xf32>, vector<32x128xf32>, vector<8x128xf32> -> vector<8x128xf32>
    %cst_82 = arith.constant dense<0.000000e+00> : vector<8x128xf32>
    %446 = tpu.matmul %416, %7, %cst_82 {dimension_numbers = #tpu.dot_dimension_numbers<[1], [0], [0], [1], [0, 0, 1, 1], [], []>} : vector<8x32xf32>, vector<32x128xf32>, vector<8x128xf32> -> vector<8x128xf32>
    %447 = arith.addf %445, %446 : vector<8x128xf32>
    %448 = vector.broadcast %9 : vector<1x128xf32> to vector<8x128xf32>
    %449 = arith.addf %447, %448 : vector<8x128xf32>
    %450 = vector.extract_strided_slice %449 {offsets = [0, 0], sizes = [8, 32], strides = [1, 1]} : vector<8x128xf32> to vector<8x32xf32>
    %451 = arith.negf %450 : vector<8x32xf32>
    %452 = math.exp %451 : vector<8x32xf32>
    %cst_83 = arith.constant 1.000000e+00 : f32
    %453 = vector.broadcast %cst_83 : f32 to vector<8x32xf32>
    %454 = arith.addf %453, %452 : vector<8x32xf32>
    %455 = arith.divf %453, %454 : vector<8x32xf32>
    %456 = vector.extract_strided_slice %449 {offsets = [0, 32], sizes = [8, 32], strides = [1, 1]} : vector<8x128xf32> to vector<8x32xf32>
    %457 = arith.negf %456 : vector<8x32xf32>
    %458 = math.exp %457 : vector<8x32xf32>
    %cst_84 = arith.constant 1.000000e+00 : f32
    %459 = vector.broadcast %cst_84 : f32 to vector<8x32xf32>
    %460 = arith.addf %459, %458 : vector<8x32xf32>
    %461 = arith.divf %459, %460 : vector<8x32xf32>
    %462 = vector.extract_strided_slice %449 {offsets = [0, 64], sizes = [8, 32], strides = [1, 1]} : vector<8x128xf32> to vector<8x32xf32>
    %463 = math.tanh %462 : vector<8x32xf32>
    %464 = vector.extract_strided_slice %449 {offsets = [0, 96], sizes = [8, 32], strides = [1, 1]} : vector<8x128xf32> to vector<8x32xf32>
    %465 = arith.negf %464 : vector<8x32xf32>
    %466 = math.exp %465 : vector<8x32xf32>
    %cst_85 = arith.constant 1.000000e+00 : f32
    %467 = vector.broadcast %cst_85 : f32 to vector<8x32xf32>
    %468 = arith.addf %467, %466 : vector<8x32xf32>
    %469 = arith.divf %467, %468 : vector<8x32xf32>
    %470 = arith.mulf %461, %414 : vector<8x32xf32>
    %471 = arith.mulf %455, %463 : vector<8x32xf32>
    %472 = arith.addf %470, %471 : vector<8x32xf32>
    %473 = math.tanh %472 : vector<8x32xf32>
    %474 = arith.mulf %469, %473 : vector<8x32xf32>
    %475 = tpu.iota {dimensions = array<i32: 0>} : vector<8x32xi32>
    %c2_i32 = arith.constant 2 : i32
    %476 = vector.broadcast %c2_i32 : i32 to vector<8x32xi32>
    %477 = arith.cmpi slt, %475, %476 : vector<8x32xi32>
    %cst_86 = arith.constant 0.000000e+00 : f32
    %478 = vector.broadcast %cst_86 : f32 to vector<8x32xf32>
    %479 = arith.select %477, %474, %478 : vector<8x32xi1>, vector<8x32xf32>
    %cst_87 = arith.constant dense<0.000000e+00> : vector<32xf32>
    %480 = vector.multi_reduction <add>, %479, %cst_87 [0] : vector<8x32xf32> to vector<32xf32>
    %481 = vector.shape_cast %480 : vector<32xf32> to vector<1x32xf32>
    %cst_88 = arith.constant 5.000000e-01 : f32
    %482 = vector.broadcast %cst_88 : f32 to vector<1x32xf32>
    %483 = arith.mulf %481, %482 : vector<1x32xf32>
    %484 = vector.broadcast %483 : vector<1x32xf32> to vector<8x32xf32>
    %485 = arith.subf %474, %484 : vector<8x32xf32>
    %cst_89 = arith.constant 0.000000e+00 : f32
    %486 = vector.broadcast %cst_89 : f32 to vector<8x32xf32>
    %487 = arith.select %477, %485, %486 : vector<8x32xi1>, vector<8x32xf32>
    %488 = arith.mulf %487, %487 : vector<8x32xf32>
    %cst_90 = arith.constant dense<0.000000e+00> : vector<32xf32>
    %489 = vector.multi_reduction <add>, %488, %cst_90 [0] : vector<8x32xf32> to vector<32xf32>
    %490 = vector.shape_cast %489 : vector<32xf32> to vector<1x32xf32>
    %cst_91 = arith.constant 5.000000e-01 : f32
    %491 = vector.broadcast %cst_91 : f32 to vector<1x32xf32>
    %492 = arith.mulf %490, %491 : vector<1x32xf32>
    %493 = vector.broadcast %483 : vector<1x32xf32> to vector<8x32xf32>
    %494 = arith.subf %474, %493 : vector<8x32xf32>
    %cst_92 = arith.constant 9.99999974E-6 : f32
    %495 = vector.broadcast %cst_92 : f32 to vector<1x32xf32>
    %496 = arith.addf %492, %495 : vector<1x32xf32>
    %497 = math.rsqrt %496 : vector<1x32xf32>
    %498 = vector.broadcast %497 : vector<1x32xf32> to vector<8x32xf32>
    %499 = arith.mulf %494, %498 : vector<8x32xf32>
    %c0_93 = arith.constant 0 : index
    %c0_94 = arith.constant 0 : index
    %500 = vector.load %arg7[%c0_93, %c0_94] : memref<1x32xf32, #tpu.memory_space<vmem>>, vector<1x32xf32>
    %501 = vector.broadcast %500 : vector<1x32xf32> to vector<8x32xf32>
    %502 = arith.mulf %499, %501 : vector<8x32xf32>
    %c0_95 = arith.constant 0 : index
    %c0_96 = arith.constant 0 : index
    %503 = vector.load %arg8[%c0_95, %c0_96] : memref<1x32xf32, #tpu.memory_space<vmem>>, vector<1x32xf32>
    %504 = vector.broadcast %503 : vector<1x32xf32> to vector<8x32xf32>
    %505 = arith.addf %502, %504 : vector<8x32xf32>
    %c0_97 = arith.constant 0 : index
    %c0_98 = arith.constant 0 : index
    %506 = vector.load %arg9[%c0_97, %c0_98] : memref<32x64xf32, #tpu.memory_space<vmem>>, vector<32x64xf32>
    %cst_99 = arith.constant dense<0.000000e+00> : vector<8x64xf32>
    %507 = tpu.matmul %505, %506, %cst_99 {dimension_numbers = #tpu.dot_dimension_numbers<[1], [0], [0], [1], [0, 0, 1, 1], [], []>} : vector<8x32xf32>, vector<32x64xf32>, vector<8x64xf32> -> vector<8x64xf32>
    %c0_100 = arith.constant 0 : index
    %c0_101 = arith.constant 0 : index
    %508 = vector.load %arg10[%c0_100, %c0_101] : memref<1x64xf32, #tpu.memory_space<vmem>>, vector<1x64xf32>
    %509 = vector.broadcast %508 : vector<1x64xf32> to vector<8x64xf32>
    %510 = arith.addf %507, %509 : vector<8x64xf32>
    %c0_102 = arith.constant 0 : index
    %c0_103 = arith.constant 0 : index
    %511 = vector.load %arg11[%c0_102, %c0_103] : memref<64x32xf32, #tpu.memory_space<vmem>>, vector<64x32xf32>
    %cst_104 = arith.constant dense<0.000000e+00> : vector<8x32xf32>
    %512 = tpu.matmul %510, %511, %cst_104 {dimension_numbers = #tpu.dot_dimension_numbers<[1], [0], [0], [1], [0, 0, 1, 1], [], []>} : vector<8x64xf32>, vector<64x32xf32>, vector<8x32xf32> -> vector<8x32xf32>
    %c0_105 = arith.constant 0 : index
    %c0_106 = arith.constant 0 : index
    %513 = vector.load %arg12[%c0_105, %c0_106] : memref<1x32xf32, #tpu.memory_space<vmem>>, vector<1x32xf32>
    %514 = vector.broadcast %513 : vector<1x32xf32> to vector<8x32xf32>
    %515 = arith.addf %512, %514 : vector<8x32xf32>
    %c0_107 = arith.constant 0 : index
    %c0_108 = arith.constant 0 : index
    %516 = vector.load %arg13[%c0_107, %c0_108] : memref<32x4xf32, #tpu.memory_space<vmem>>, vector<32x4xf32>
    %cst_109 = arith.constant dense<0.000000e+00> : vector<8x4xf32>
    %517 = tpu.matmul %515, %516, %cst_109 {dimension_numbers = #tpu.dot_dimension_numbers<[1], [0], [0], [1], [0, 0, 1, 1], [], []>} : vector<8x32xf32>, vector<32x4xf32>, vector<8x4xf32> -> vector<8x4xf32>
    %c0_110 = arith.constant 0 : index
    %c0_111 = arith.constant 0 : index
    %518 = vector.load %arg14[%c0_110, %c0_111] : memref<1x4xf32, #tpu.memory_space<vmem>>, vector<1x4xf32>
    %519 = vector.broadcast %518 : vector<1x4xf32> to vector<8x4xf32>
    %520 = arith.addf %517, %519 : vector<8x4xf32>
    %521 = vector.extract_strided_slice %520 {offsets = [0, 0], sizes = [2, 4], strides = [1, 1]} : vector<8x4xf32> to vector<2x4xf32>
    %c0_112 = arith.constant 0 : index
    %c0_113 = arith.constant 0 : index
    %522 = vector.load %arg15[%c0_112, %c0_113] : memref<2x4xf32, #tpu.memory_space<vmem>>, vector<2x4xf32>
    tpu.vector_store %arg15[%c0_112, %c0_113], %521 {strides = array<i32>} : memref<2x4xf32, #tpu.memory_space<vmem>>, vector<2x4xf32>,
    return
  }
}

</mosaic_0001>

<bundles_post_ra>
// kernel: lstm_encoder_dense_forward.1
= control target key start
LH: loop header
LB: loop body
LE: loop exit
PB: predicated region body
PF: predicated region fallthrough
CT: control target
= control target key end

     0   :  { %vm68_vm0 = vcmask 130048   ;;  %v3558_v3 = vmov 0.0|0.0   ;;  %vm3559_vm1 = vmmov 0   ;;  %v3560_v10 = vmov 0.0   ;;  %s4155_s0 = inlined_call_operand.vmem [shape: f32[64,16], index: 0, kind: input, shape index: {}]   ;;  %s4156_s1 = inlined_call_operand.vmem [shape: f32[16,128], index: 1, kind: input, shape index: {}]   ;;  %s4157_s2 = inlined_call_operand.vmem [shape: f32[32,128], index: 2, kind: input, shape index: {}]   ;;  %s4158_s3 = inlined_call_operand.vmem [shape: f32[1,128], index: 3, kind: input, shape index: {}]   ;;  %s4159_s4 = inlined_call_operand.vmem [shape: f32[32,128], index: 4, kind: input, shape index: {}]   ;;  %s4160_s5 = inlined_call_operand.vmem [shape: f32[32,128], index: 5, kind: input, shape index: {}]   ;;  %s4161_s6 = inlined_call_operand.vmem [shape: f32[1,128], index: 6, kind: input, shape index: {}]   ;;  %s4162_s7 = inlined_call_operand.vmem [shape: f32[1,32], index: 7, kind: input, shape index: {}]   ;;  %s4163_s8 = inlined_call_operand.vmem [shape: f32[1,32], index: 8, kind: input, shape index: {}]   ;;  %s4164_s9 = inlined_call_operand.vmem [shape: f32[32,64], index: 9, kind: input, shape index: {}]   ;;  %s4165_s10 = inlined_call_operand.vmem [shape: f32[1,64], index: 10, kind: input, shape index: {}]   ;;  %s4166_s11 = inlined_call_operand.vmem [shape: f32[64,32], index: 11, kind: input, shape index: {}]   ;;  %s4167_s12 = inlined_call_operand.vmem [shape: f32[1,32], index: 12, kind: input, shape index: {}]   ;;  %s4168_s13 = inlined_call_operand.vmem [shape: f32[32,4], index: 13, kind: input, shape index: {}]   ;;  %s4169_s14 = inlined_call_operand.vmem [shape: f32[1,4], index: 14, kind: input, shape index: {}]   ;;  %s4170_s15 = inlined_call_operand.hbm [shape: f32[2,4], index: 15, kind: output, shape index: {}]  }
   0x1   :  { %v59_v0 = vld [vmem:[%s4156_s1] sm:$0xff]  ;;  %v60_v1 = vld [vmem:[%s4156_s1 + $0x8] sm:$0xff]  ;;  %3228 = vmatprep.subr.bf16.mxu1 %v3558_v3  ;;  %v200_v8 = vld [vmem:[%s4157_s2 + $0x10] sm:$0xff]  ;;  %2927 = vmatprep.mubr.msk.f32.mxu1 %vm3559_vm1, %v3560_v10 }
   0x2   :  { %v198_v2 = vld [vmem:[%s4157_s2] sm:$0xff]  ;;  %v3224_v4 = vpack.c.bf16 %v60_v1, %v59_v0  ;;  %v199_v5 = vld [vmem:[%s4157_s2 + $0x8] sm:$0xff]  ;;  %v201_v9 = vld [vmem:[%s4157_s2 + $0x18] sm:$0xff] }
   0x3   :  { %v51_v6 = vld [vmem:[%s4155_s0] sm:$0xff]  ;;  %v3661_v7 = vpack.c.bf16 %v199_v5, %v198_v2 }
   0x4   :  { %2907 = vmatprep.mubr.msk.f32.mxu0 %vm68_vm0, %v51_v6 }
   0x5   :  { %20 = vsyncpa [#allocation3], 0  ;;  %3225 = vmatprep.subr.bf16.mxu0 %v3224_v4  ;;  %3230 = vmatpush3.bf16.msra.mxu1 %v3661_v7  ;;  %v52_v11 = vld [vmem:[%s4155_s0 + $0x8] sm:$0xff]  ;;  %v3676_v12 = vpack.c.bf16 %v201_v9, %v200_v8  ;;  %v3689_v13 = vld [vmem:[%s4158_s3] ss:$0 sm:$0xff]  ;;  %s3561_s19 = smov 64  }
   0x6   :  { %3227 = vmatpush3.bf16.msra.mxu0 %v3224_v4  ;;  %3231 = vmatprep.subr.bf16.mxu1 %v3558_v3  ;;  %s3562_s20 = smov 32   ;;  %v206_v30 = vld [vmem:[%s4159_s4] sm:$0xff]  ;;  %v207_v31 = vld [vmem:[%s4159_s4 + $0x8] sm:$0xff]  ;;  %v53_v35 = vld [vmem:[%s4155_s0 + $0x10] sm:$0xff]  ;;  %vm211_vm2 = vcmask 261120   ;;  %s3563_s18 = smov 96  }
   0x7   :  { %3240 = vmatprep.subr.bf16.mxu0 %v3558_v3  ;;  %v202_v32 = vld [vmem:[%s4160_s5] sm:$0xff]  ;;  %v3708_v33 = vpack.c.bf16 %v207_v31, %v206_v30  ;;  %v203_v34 = vld [vmem:[%s4160_s5 + $0x8] sm:$0xff]  ;;  %v54_v36 = vld [vmem:[%s4155_s0 + $0x18] sm:$0xff]  ;;  %vm2380_vm4 = vcmask 1048320   ;;  %vm2524_vm5 = vcmask 523264   ;;  %s3564_s28 = smov [#allocation2]  }
   0x8   :  { %v3719_v37 = vpack.c.bf16 %v203_v34, %v202_v32  ;;  %v204_v38 = vld [vmem:[%s4160_s5 + $0x10] sm:$0xff]  ;;  %v205_v39 = vld [vmem:[%s4160_s5 + $0x18] sm:$0xff]  ;;  %v55_v40 = vld [vmem:[%s4155_s0 + $0x20] sm:$0xff]  ;;  %vm2682_vm6 = vcmask 25600  }
   0x9   :  { %2908 = vmatmul.mubr.msk.f32.vlgmr.msra.gmra.mrb[0].mxu0 %vm68_vm0, %v52_v11  ;;  %3233 = vmatpush3.bf16.msra.mxu1 %v3676_v12  ;;  %v208_v41 = vld [vmem:[%s4159_s4 + $0x10] sm:$0xff]  ;;  %v209_v42 = vld [vmem:[%s4159_s4 + $0x18] sm:$0xff]  ;;  %v3740_v43 = vpack.c.bf16 %v205_v39, %v204_v38  ;;  %v56_v45 = vld [vmem:[%s4155_s0 + $0x28] sm:$0xff]  ;;  %s2690_s4 = sshll.u32 %s3564_s28, 4  ;;  %s2691_s4 = int_to_ptr.vmem [resolvable:$true] %s2690_s4 }
   0xa   :  { %3234 = vmatprep.subr.bf16.mxu1 %v3558_v3  ;;  %2910 = vmatprep.mubr.msk.f32.mxu0 %vm68_vm0, %v53_v35  ;;  %v3742_v44 = vpack.c.bf16 %v209_v42, %v208_v41  ;;  %v57_v46 = vld [vmem:[%s4155_s0 + $0x30] sm:$0xff]  ;;  %v58_v47 = vld [vmem:[%s4155_s0 + $0x38] sm:$0xff]  ;;  %v3805_v61 = vld [vmem:[%s4161_s6] ss:$0 sm:$0xff]  ;;  %p3539_p1 = scmp.lt.s32.totalorder %s2691_s4, %s2691_s4 }
   0xb   :  { %3242 = vmatpush3.bf16.msra.mxu0 %v3708_v33 }
   0xc   :  { %2928 = vmatmul.mubr.f32.vlgmr.msra.gmra.mrb[0].mxu1 %v3560_v10  ;;  %3243 = vmatprep.subr.bf16.mxu0 %v3558_v3 }
   0xd   :  { %2938 = vmatprep.mubr.msk.f32.mxu1 %vm3559_vm1, %v3560_v10  ;;  %3236 = vmatpush3.bf16.msra.mxu1 %v3719_v37 }
   0xe   :  { %2911 = vmatmul.mubr.msk.f32.gmra.mrb[2].mxu0 %vm68_vm0, %v54_v36  ;;  %3237 = vmatprep.subr.bf16.mxu1 %v3558_v3 }
   0xf   :  { %2913 = vmatprep.mubr.msk.f32.mxu0 %vm68_vm0, %v55_v40  ;;  %3245 = vmatpush3.bf16.msra.mxu0 %v3742_v44 }
  0x10   :  { %3252 = vmatprep.subr.bf16.mxu0 %v3558_v3 }
  0x11   :  { %3239 = vmatpush3.bf16.msra.mxu1 %v3740_v43 }
  0x12   :  { %2914 = vmatmul.mubr.msk.f32.gmra.mrb[4].mxu0 %vm68_vm0, %v56_v45  ;;  %3246 = vmatprep.subr.bf16.mxu1 %v3558_v3 }
  0x13   :  { %2916 = vmatprep.mubr.msk.f32.mxu0 %vm68_vm0, %v57_v46 }
  0x14   :  { %2939 = vmatmul.mubr.f32.vlgmr.msra.gmra.mrb[2].mxu1 %v3560_v10 }
  0x15   :  { %3248 = vmatpush3.bf16.msra.mxu1 %v3661_v7  ;;  %2960 = vmatprep.mubr.msk.f32.mxu1 %vm3559_vm1, %v3560_v10 }
  0x16   :  { %2917 = vmatmul.mubr.msk.f32.gmra.mrb[6].mxu0 %vm68_vm0, %v58_v47  ;;  %3249 = vmatprep.subr.bf16.mxu1 %v3558_v3 }
  0x17   :  { %2949 = vmatprep.mubr.msk.f32.mxu0 %vm3559_vm1, %v3560_v10 }
  0x19   :  { %3251 = vmatpush3.bf16.msra.mxu1 %v3676_v12 }
  0x1a   :  { %3258 = vmatprep.subr.bf16.mxu1 %v3558_v3 }
  0xdc   :  { %v3691_v14 = vpop.f32.mrb[0].mxu0 }
  0xdd   :  { %v159_v15 = vpop.f32.mrb[1].mxu0  ;;  %v165_v60 = vadd.f32 %v3691_v14, %v3689_v13 }
  0xde   :  { %v160_v16 = vadd.f32 %v3689_v13, %v159_v15 }
  0xdf   :  { %v281_v17 = vpop.f32.mrb[0].mxu1 }
  0xe0   :  { %v285_v18 = vadd.f32 %v281_v17, %v160_v16  ;;  %v2929_v19 = vpop.f32.mrb[1].mxu1 }
  0xe1   :  { %v3774_v51 = vpop.f32.mrb[2].mxu0 }
  0xe2   :  { %3403 = vtanh.f32 %v285_v18  ;;  %v2707_v21 = vmul.f32 -1.442695, %v285_v18  ;;  %v3776_v52 = vpop.f32.mrb[3].mxu0 }
  0xe4   :  { %3405 = vpow2.f32 %v2707_v21 }
  0xe5   :  { %v3778_v53 = vpop.f32.mrb[4].mxu0 }
  0xe6   :  { %v3780_v54 = vpop.f32.mrb[5].mxu0 }
  0xe7   :  { %v376_v55 = vpop.f32.mrb[2].mxu1 }
  0xe8   :  { %v2940_v57 = vpop.f32.mrb[3].mxu1 }
  0xe9   :  { %v3782_v56 = vpop.f32.mrb[6].mxu0 }
  0xea   :  { %v3784_v58 = vpop.f32.mrb[7].mxu0 }
  0xec   :  { %v3404_v20 = vpop.eup %3403 }
  0xed   :  { %295 = vrot.lane.b32.xlu0 %v3404_v20, %s3561_s19 }
  0xee   :  { %v3406_v22 = vpop.eup %3405 }
  0xef   :  { %v289_v23 = vadd.f32 1.0, %v3406_v22 }
  0xf1   :  { %3407 = vrcp.f32 %v289_v23 }
  0xfb   :  { %v3408_v24 = vpop.eup %3407 }
  0xfc   :  { %v293_v27 = vmul.f32 0.0, %v3408_v24 }
 0x15f   :  { %v296_v25 = vpop.permute.xlu0 %295 }
 0x160   :  { %v298_v26 = vmul.f32 %v3408_v24, %v296_v25 }
 0x162   :  { %300 = vrot.lane.b32.xlu0 %v298_v26, %s3562_s20 }
 0x1d4   :  { %v301_v28 = vpop.permute.xlu0 %300 }
 0x1d5   :  { %v3696_v29 = vadd.f32 %v301_v28, %v293_v27 }
 0x1d7   :  { %3409 = vtanh.f32 %v3696_v29 }
 0x1e1   :  { %v3410_v48 = vpop.eup %3409 }
 0x1e2   :  { %306 = vrot.lane.b32.xlu1 %v3410_v48, %s3561_s19  ;;  %v170_v48 = vadd.f32 %v3689_v13, %v3776_v52 }
 0x254   :  { %v307_v49 = vpop.permute.xlu1 %306 }
 0x255   :  { %v309_v50 = vmul.f32 %v3408_v24, %v307_v49 }
 0x257   :  { %381 = vrot.lane.b32.xlu1 %v309_v50, %s3562_s20 }
 0x2c9   :  { %v382_v59 = vpop.permute.xlu1 %381 }
 0x2ca   :  { %2950 = vmatmul.mubr.msk.f32.vlgmr.msra.gmra.mrb[8].mxu0 %vm211_vm2, %v382_v59  ;;  %2961 = vmatmul.mubr.msk.f32.vlgmr.msra.gmra.mrb[4].mxu1 %vm211_vm2, %v382_v59 }
 0x2cb   :  { %3260 = vmatpush3.bf16.msra.mxu1 %v3708_v33  ;;  %3254 = vmatpush3.bf16.msra.mxu0 %v3719_v37 }
 0x2cc   :  { %3261 = vmatprep.subr.bf16.mxu1 %v3558_v3  ;;  %3255 = vmatprep.subr.bf16.mxu0 %v3558_v3 }
 0x2cd   :  { %2982 = vmatprep.mubr.msk.f32.mxu1 %vm3559_vm1, %v3560_v10  ;;  %2971 = vmatprep.mubr.msk.f32.mxu0 %vm3559_vm1, %v3560_v10 }
 0x2cf   :  { %3263 = vmatpush3.bf16.msra.mxu1 %v3742_v44  ;;  %3257 = vmatpush3.bf16.msra.mxu0 %v3740_v43 }
 0x2d0   :  { %3264 = vmatprep.subr.bf16.mxu0 %v3558_v3  ;;  %3270 = vmatprep.subr.bf16.mxu1 %v3558_v3 }
 0x39d   :  { %v451_v62 = vpop.f32.mrb[8].mxu0  ;;  %v552_v63 = vpop.f32.mrb[4].mxu1 }
 0x39e   :  { %v452_v0 = vadd.f32 %v451_v62, %v376_v55  ;;  %v556_v1 = vadd.f32 %v552_v63, %v165_v60  ;;  %v2951_v2 = vpop.f32.mrb[9].mxu0  ;;  %v2962_v4 = vpop.f32.mrb[5].mxu1 }
 0x3a0   :  { %v461_v5 = vadd.f32 %v3805_v61, %v452_v0  ;;  %3411 = vtanh.f32 %v556_v1  ;;  %v2712_v9 = vmul.f32 -1.442695, %v556_v1 }
 0x3a2   :  { %3413 = vtanh.f32 %v461_v5  ;;  %v2710_v11 = vmul.f32 -1.442695, %v461_v5 }
 0x3a3   :  { %3415 = vpow2.f32 %v2712_v9 }
 0x3a4   :  { %3417 = vpow2.f32 %v2710_v11 }
 0x3aa   :  { %v3412_v6 = vpop.eup %3411 }
 0x3ab   :  { %566 = vrot.lane.b32.xlu1 %v3412_v6, %s3561_s19 }
 0x3ac   :  { %v3414_v8 = vpop.eup %3413 }
 0x3ad   :  { %471 = vrot.lane.b32.xlu0 %v3414_v8, %s3561_s19  ;;  %v3416_v14 = vpop.eup %3415 }
 0x3ae   :  { %v3418_v15 = vpop.eup %3417  ;;  %v560_v16 = vadd.f32 1.0, %v3416_v14 }
 0x3af   :  { %v465_v17 = vadd.f32 1.0, %v3418_v15 }
 0x3b0   :  { %3419 = vrcp.f32 %v560_v16 }
 0x3b1   :  { %3421 = vrcp.f32 %v465_v17 }
 0x3ba   :  { %v3420_v18 = vpop.eup %3419 }
 0x3bb   :  { %v3422_v21 = vpop.eup %3421  ;;  %v564_v24 = vmul.f32 %v3420_v18, %v3696_v29 }
 0x3bc   :  { %v469_v27 = vmul.f32 0.0, %v3422_v21 }
 0x41d   :  { %v567_v19 = vpop.permute.xlu1 %566 }
 0x41e   :  { %v569_v20 = vmul.f32 %v3420_v18, %v567_v19 }
 0x41f   :  { %v472_v22 = vpop.permute.xlu0 %471 }
 0x420   :  { %v474_v23 = vmul.f32 %v3422_v21, %v472_v22  ;;  %571 = vrot.lane.b32.xlu1 %v569_v20, %s3562_s20 }
 0x422   :  { %476 = vrot.lane.b32.xlu0 %v474_v23, %s3562_s20 }
 0x492   :  { %v572_v25 = vpop.permute.xlu1 %571 }
 0x493   :  { %v3813_v26 = vadd.f32 %v572_v25, %v564_v24 }
 0x494   :  { %v477_v28 = vpop.permute.xlu0 %476 }
 0x495   :  { %3423 = vtanh.f32 %v3813_v26  ;;  %v3816_v30 = vadd.f32 %v477_v28, %v469_v27 }
 0x497   :  { %3425 = vtanh.f32 %v3816_v30 }
 0x49f   :  { %v3424_v31 = vpop.eup %3423 }
 0x4a0   :  { %577 = vrot.lane.b32.xlu1 %v3424_v31, %s3561_s19  ;;  %v175_v31 = vadd.f32 %v3774_v51, %v3689_v13 }
 0x4a1   :  { %v3426_v32 = vpop.eup %3425 }
 0x4a2   :  { %482 = vrot.lane.b32.xlu0 %v3426_v32, %s3561_s19 }
 0x512   :  { %v578_v34 = vpop.permute.xlu1 %577 }
 0x513   :  { %v580_v35 = vmul.f32 %v3420_v18, %v578_v34 }
 0x514   :  { %v483_v29 = vpop.permute.xlu0 %482 }
 0x515   :  { %v485_v36 = vmul.f32 %v3422_v21, %v483_v29  ;;  %657 = vrot.lane.b32.xlu1 %v580_v35, %s3562_s20 }
 0x517   :  { %582 = vrot.lane.b32.xlu0 %v485_v36, %s3562_s20 }
 0x587   :  { %v658_v38 = vpop.permute.xlu1 %657 }
 0x588   :  { %2983 = vmatmul.mubr.msk.f32.vlgmr.msra.gmra.mrb[6].mxu1 %vm211_vm2, %v658_v38 }
 0x589   :  { %v583_v39 = vpop.permute.xlu0 %582  ;;  %3272 = vmatpush3.bf16.msra.mxu1 %v3719_v37  ;;  %3004 = vmatprep.mubr.msk.f32.mxu1 %vm3559_vm1, %v3560_v10 }
 0x58a   :  { %2972 = vmatmul.mubr.msk.f32.vlgmr.msra.gmra.mrb[10].mxu0 %vm211_vm2, %v583_v39  ;;  %3273 = vmatprep.subr.bf16.mxu1 %v3558_v3 }
 0x58b   :  { %3266 = vmatpush3.bf16.msra.mxu0 %v3661_v7  ;;  %2993 = vmatprep.mubr.msk.f32.mxu0 %vm3559_vm1, %v3560_v10 }
 0x58c   :  { %3267 = vmatprep.subr.bf16.mxu0 %v3558_v3 }
 0x58d   :  { %3275 = vmatpush3.bf16.msra.mxu1 %v3740_v43 }
 0x58e   :  { %3282 = vmatprep.subr.bf16.mxu1 %v3558_v3 }
 0x58f   :  { %3269 = vmatpush3.bf16.msra.mxu0 %v3676_v12 }
 0x590   :  { %3276 = vmatprep.subr.bf16.mxu0 %v3558_v3 }
 0x592   :  { %2994 = vmatmul.mubr.msk.f32.vlgmr.msra.gmra.mrb[12].mxu0 %vm211_vm2, %v658_v38 }
 0x593   :  { %3278 = vmatpush3.bf16.msra.mxu0 %v3708_v33  ;;  %3015 = vmatprep.mubr.msk.f32.mxu0 %vm3559_vm1, %v3560_v10 }
 0x594   :  { %3279 = vmatprep.subr.bf16.mxu0 %v3558_v3 }
 0x597   :  { %3281 = vmatpush3.bf16.msra.mxu0 %v3742_v44 }
 0x598   :  { %3288 = vmatprep.subr.bf16.mxu0 %v3558_v3 }
 0x65b   :  { %v727_v40 = vpop.f32.mrb[6].mxu1 }
 0x65c   :  { %v2984_v41 = vpop.f32.mrb[7].mxu1 }
 0x65d   :  { %v652_v42 = vpop.f32.mrb[10].mxu0 }
 0x65e   :  { %v728_v45 = vadd.f32 %v727_v40, %v652_v42  ;;  %v2973_v46 = vpop.f32.mrb[11].mxu0 }
 0x660   :  { %v731_v47 = vadd.f32 %v3805_v61, %v728_v45 }
 0x662   :  { %3427 = vtanh.f32 %v731_v47  ;;  %v2715_v60 = vmul.f32 -1.442695, %v731_v47 }
 0x665   :  { %v822_v49 = vpop.f32.mrb[12].mxu0 }
 0x666   :  { %v826_v50 = vadd.f32 %v822_v49, %v170_v48  ;;  %v2995_v55 = vpop.f32.mrb[13].mxu0 }
 0x668   :  { %3429 = vtanh.f32 %v826_v50  ;;  %v2717_v62 = vmul.f32 -1.442695, %v826_v50 }
 0x669   :  { %3431 = vpow2.f32 %v2715_v60 }
 0x66a   :  { %3433 = vpow2.f32 %v2717_v62 }
 0x66c   :  { %v3428_v57 = vpop.eup %3427 }
 0x66d   :  { %741 = vrot.lane.b32.xlu0 %v3428_v57, %s3561_s19 }
 0x672   :  { %v3430_v59 = vpop.eup %3429 }
 0x673   :  { %836 = vrot.lane.b32.xlu1 %v3430_v59, %s3561_s19  ;;  %v3432_v63 = vpop.eup %3431 }
 0x674   :  { %v735_v0 = vadd.f32 1.0, %v3432_v63  ;;  %v3434_v1 = vpop.eup %3433 }
 0x675   :  { %v830_v2 = vadd.f32 1.0, %v3434_v1 }
 0x676   :  { %3435 = vrcp.f32 %v735_v0 }
 0x677   :  { %3437 = vrcp.f32 %v830_v2 }
 0x680   :  { %v3436_v52 = vpop.eup %3435 }
 0x681   :  { %v3438_v6 = vpop.eup %3437  ;;  %v739_v11 = vmul.f32 %v3436_v52, %v3816_v30 }
 0x682   :  { %v834_v16 = vmul.f32 %v3438_v6, %v3813_v26 }
 0x6df   :  { %v742_v4 = vpop.permute.xlu0 %741 }
 0x6e0   :  { %v744_v5 = vmul.f32 %v3436_v52, %v742_v4 }
 0x6e2   :  { %746 = vrot.lane.b32.xlu0 %v744_v5, %s3562_s20 }
 0x6e5   :  { %v837_v8 = vpop.permute.xlu1 %836 }
 0x6e6   :  { %v839_v9 = vmul.f32 %v3438_v6, %v837_v8 }
 0x6e8   :  { %841 = vrot.lane.b32.xlu1 %v839_v9, %s3562_s20 }
 0x754   :  { %v747_v14 = vpop.permute.xlu0 %746 }
 0x755   :  { %v3852_v15 = vadd.f32 %v747_v14, %v739_v11 }
 0x757   :  { %3439 = vtanh.f32 %v3852_v15 }
 0x75a   :  { %v842_v17 = vpop.permute.xlu1 %841 }
 0x75b   :  { %v3856_v18 = vadd.f32 %v842_v17, %v834_v16 }
 0x75d   :  { %3441 = vtanh.f32 %v3856_v18 }
 0x761   :  { %v3440_v19 = vpop.eup %3439 }
 0x762   :  { %752 = vrot.lane.b32.xlu0 %v3440_v19, %s3561_s19 }
 0x767   :  { %v3442_v20 = vpop.eup %3441 }
 0x768   :  { %847 = vrot.lane.b32.xlu1 %v3442_v20, %s3561_s19 }
 0x7d4   :  { %v753_v21 = vpop.permute.xlu0 %752 }
 0x7d5   :  { %v755_v22 = vmul.f32 %v3436_v52, %v753_v21  ;;  %v180_v21 = vadd.f32 %v3689_v13, %v3780_v54 }
 0x7d7   :  { %852 = vrot.lane.b32.xlu0 %v755_v22, %s3562_s20 }
 0x7da   :  { %v848_v23 = vpop.permute.xlu1 %847 }
 0x7db   :  { %v850_v24 = vmul.f32 %v3438_v6, %v848_v23 }
 0x7dd   :  { %927 = vrot.lane.b32.xlu1 %v850_v24, %s3562_s20 }
 0x849   :  { %v853_v25 = vpop.permute.xlu0 %852 }
 0x84a   :  { %3005 = vmatmul.mubr.msk.f32.vlgmr.msra.gmra.mrb[8].mxu1 %vm211_vm2, %v853_v25 }
 0x84b   :  { %3284 = vmatpush3.bf16.msra.mxu1 %v3661_v7  ;;  %3026 = vmatprep.mubr.msk.f32.mxu1 %vm3559_vm1, %v3560_v10 }
 0x84c   :  { %3285 = vmatprep.subr.bf16.mxu1 %v3558_v3 }
 0x84f   :  { %3287 = vmatpush3.bf16.msra.mxu1 %v3676_v12  ;;  %v928_v26 = vpop.permute.xlu1 %927 }
 0x850   :  { %3016 = vmatmul.mubr.msk.f32.vlgmr.msra.gmra.mrb[14].mxu0 %vm211_vm2, %v928_v26  ;;  %3294 = vmatprep.subr.bf16.mxu1 %v3558_v3 }
 0x851   :  { %3290 = vmatpush3.bf16.msra.mxu0 %v3719_v37  ;;  %3037 = vmatprep.mubr.msk.f32.mxu0 %vm3559_vm1, %v3560_v10 }
 0x852   :  { %3027 = vmatmul.mubr.msk.f32.vlgmr.msra.gmra.mrb[10].mxu1 %vm211_vm2, %v928_v26  ;;  %3291 = vmatprep.subr.bf16.mxu0 %v3558_v3 }
 0x853   :  { %3296 = vmatpush3.bf16.msra.mxu1 %v3708_v33  ;;  %3048 = vmatprep.mubr.msk.f32.mxu1 %vm3559_vm1, %v3560_v10 }
 0x854   :  { %3297 = vmatprep.subr.bf16.mxu1 %v3558_v3 }
 0x855   :  { %3293 = vmatpush3.bf16.msra.mxu0 %v3740_v43 }
 0x856   :  { %3300 = vmatprep.subr.bf16.mxu0 %v3558_v3 }
 0x857   :  { %3299 = vmatpush3.bf16.msra.mxu1 %v3742_v44 }
 0x858   :  { %3306 = vmatprep.subr.bf16.mxu1 %v3558_v3 }
 0x91d   :  { %v922_v27 = vpop.f32.mrb[8].mxu1 }
 0x91e   :  { %v3006_v28 = vpop.f32.mrb[9].mxu1 }
 0x923   :  { %v997_v30 = vpop.f32.mrb[14].mxu0 }
 0x924   :  { %v998_v32 = vadd.f32 %v997_v30, %v922_v27  ;;  %v3017_v34 = vpop.f32.mrb[15].mxu0 }
 0x925   :  { %v1092_v35 = vpop.f32.mrb[10].mxu1 }
 0x926   :  { %v1001_v29 = vadd.f32 %v3805_v61, %v998_v32  ;;  %v1096_v36 = vadd.f32 %v1092_v35, %v175_v31  ;;  %v3028_v38 = vpop.f32.mrb[11].mxu1 }
 0x928   :  { %3443 = vtanh.f32 %v1001_v29  ;;  %v2720_v41 = vmul.f32 -1.442695, %v1001_v29  ;;  %v2722_v42 = vmul.f32 -1.442695, %v1096_v36 }
 0x929   :  { %3445 = vtanh.f32 %v1096_v36 }
 0x92a   :  { %3447 = vpow2.f32 %v2720_v41 }
 0x92b   :  { %3449 = vpow2.f32 %v2722_v42 }
 0x932   :  { %v3444_v39 = vpop.eup %3443 }
 0x933   :  { %v3446_v40 = vpop.eup %3445  ;;  %1011 = vrot.lane.b32.xlu0 %v3444_v39, %s3561_s19 }
 0x934   :  { %1106 = vrot.lane.b32.xlu1 %v3446_v40, %s3561_s19  ;;  %v3448_v51 = vpop.eup %3447 }
 0x935   :  { %v3450_v45 = vpop.eup %3449  ;;  %v1005_v46 = vadd.f32 1.0, %v3448_v51 }
 0x936   :  { %v1100_v47 = vadd.f32 1.0, %v3450_v45 }
 0x937   :  { %3451 = vrcp.f32 %v1005_v46 }
 0x938   :  { %3453 = vrcp.f32 %v1100_v47 }
 0x941   :  { %v3452_v48 = vpop.eup %3451 }
 0x942   :  { %v3454_v50 = vpop.eup %3453  ;;  %v1009_v60 = vmul.f32 %v3452_v48, %v3852_v15 }
 0x943   :  { %v1104_v62 = vmul.f32 %v3454_v50, %v3856_v18 }
 0x9a5   :  { %v1012_v49 = vpop.permute.xlu0 %1011 }
 0x9a6   :  { %v1107_v55 = vpop.permute.xlu1 %1106  ;;  %v1014_v57 = vmul.f32 %v3452_v48, %v1012_v49 }
 0x9a7   :  { %v1109_v59 = vmul.f32 %v3454_v50, %v1107_v55 }
 0x9a8   :  { %1016 = vrot.lane.b32.xlu0 %v1014_v57, %s3562_s20 }
 0x9a9   :  { %1111 = vrot.lane.b32.xlu1 %v1109_v59, %s3562_s20 }
 0xa1a   :  { %v1017_v63 = vpop.permute.xlu0 %1016 }
 0xa1b   :  { %v1112_v0 = vpop.permute.xlu1 %1111  ;;  %v3893_v1 = vadd.f32 %v1017_v63, %v1009_v60 }
 0xa1c   :  { %v3895_v2 = vadd.f32 %v1112_v0, %v1104_v62 }
 0xa1d   :  { %3455 = vtanh.f32 %v3893_v1 }
 0xa1e   :  { %3457 = vtanh.f32 %v3895_v2 }
 0xa27   :  { %v3456_v52 = vpop.eup %3455 }
 0xa28   :  { %v3458_v4 = vpop.eup %3457  ;;  %1022 = vrot.lane.b32.xlu0 %v3456_v52, %s3561_s19  ;;  %v185_v52 = vadd.f32 %v3778_v53, %v3689_v13 }
 0xa29   :  { %1117 = vrot.lane.b32.xlu1 %v3458_v4, %s3561_s19 }
 0xa9a   :  { %v1023_v5 = vpop.permute.xlu0 %1022 }
 0xa9b   :  { %v1118_v6 = vpop.permute.xlu1 %1117  ;;  %v1025_v8 = vmul.f32 %v3452_v48, %v1023_v5 }
 0xa9c   :  { %v1120_v9 = vmul.f32 %v3454_v50, %v1118_v6 }
 0xa9d   :  { %1122 = vrot.lane.b32.xlu0 %v1025_v8, %s3562_s20 }
 0xa9e   :  { %1197 = vrot.lane.b32.xlu1 %v1120_v9, %s3562_s20 }
 0xb0f   :  { %v1123_v11 = vpop.permute.xlu0 %1122 }
 0xb10   :  { %v1198_v14 = vpop.permute.xlu1 %1197  ;;  %3038 = vmatmul.mubr.msk.f32.vlgmr.msra.gmra.mrb[16].mxu0 %vm211_vm2, %v1123_v11 }
 0xb11   :  { %3049 = vmatmul.mubr.msk.f32.vlgmr.msra.gmra.mrb[12].mxu1 %vm211_vm2, %v1198_v14  ;;  %3302 = vmatpush3.bf16.msra.mxu0 %v3661_v7 }
 0xb12   :  { %3303 = vmatprep.subr.bf16.mxu0 %v3558_v3  ;;  %3059 = vmatprep.mubr.msk.f32.mxu0 %vm3559_vm1, %v3560_v10 }
 0xb13   :  { %3308 = vmatpush3.bf16.msra.mxu1 %v3719_v37  ;;  %3070 = vmatprep.mubr.msk.f32.mxu1 %vm3559_vm1, %v3560_v10 }
 0xb14   :  { %3309 = vmatprep.subr.bf16.mxu1 %v3558_v3 }
 0xb15   :  { %3305 = vmatpush3.bf16.msra.mxu0 %v3676_v12 }
 0xb16   :  { %3312 = vmatprep.subr.bf16.mxu0 %v3558_v3 }
 0xb17   :  { %3311 = vmatpush3.bf16.msra.mxu1 %v3740_v43 }
 0xb18   :  { %3060 = vmatmul.mubr.msk.f32.vlgmr.msra.gmra.mrb[18].mxu0 %vm211_vm2, %v1198_v14  ;;  %3318 = vmatprep.subr.bf16.mxu1 %v3558_v3 }
 0xb19   :  { %3314 = vmatpush3.bf16.msra.mxu0 %v3708_v33  ;;  %3081 = vmatprep.mubr.msk.f32.mxu0 %vm3559_vm1, %v3560_v10 }
 0xb1a   :  { %3315 = vmatprep.subr.bf16.mxu0 %v3558_v3 }
 0xb1d   :  { %3317 = vmatpush3.bf16.msra.mxu0 %v3742_v44 }
 0xb1e   :  { %3324 = vmatprep.subr.bf16.mxu0 %v3558_v3 }
 0xbe3   :  { %v1192_v15 = vpop.f32.mrb[16].mxu0 }
 0xbe4   :  { %v1267_v16 = vpop.f32.mrb[12].mxu1  ;;  %v3039_v17 = vpop.f32.mrb[17].mxu0 }
 0xbe5   :  { %v1268_v18 = vadd.f32 %v1267_v16, %v1192_v15  ;;  %v3050_v19 = vpop.f32.mrb[13].mxu1 }
 0xbe7   :  { %v1271_v20 = vadd.f32 %v3805_v61, %v1268_v18 }
 0xbe9   :  { %3459 = vtanh.f32 %v1271_v20  ;;  %v2725_v27 = vmul.f32 -1.442695, %v1271_v20 }
 0xbeb   :  { %v1362_v22 = vpop.f32.mrb[18].mxu0 }
 0xbec   :  { %v1366_v23 = vadd.f32 %v1362_v22, %v180_v21  ;;  %v3061_v24 = vpop.f32.mrb[19].mxu0 }
 0xbee   :  { %3461 = vtanh.f32 %v1366_v23  ;;  %v2727_v28 = vmul.f32 -1.442695, %v1366_v23 }
 0xbef   :  { %3463 = vpow2.f32 %v2725_v27 }
 0xbf0   :  { %3465 = vpow2.f32 %v2727_v28 }
 0xbf3   :  { %v3460_v25 = vpop.eup %3459 }
 0xbf4   :  { %1281 = vrot.lane.b32.xlu0 %v3460_v25, %s3561_s19 }
 0xbf8   :  { %v3462_v26 = vpop.eup %3461 }
 0xbf9   :  { %1376 = vrot.lane.b32.xlu1 %v3462_v26, %s3561_s19  ;;  %v3464_v30 = vpop.eup %3463 }
 0xbfa   :  { %v1275_v31 = vadd.f32 1.0, %v3464_v30  ;;  %v3466_v32 = vpop.eup %3465 }
 0xbfb   :  { %v1370_v34 = vadd.f32 1.0, %v3466_v32 }
 0xbfc   :  { %3467 = vrcp.f32 %v1275_v31 }
 0xbfd   :  { %3469 = vrcp.f32 %v1370_v34 }
 0xc06   :  { %v3468_v54 = vpop.eup %3467 }
 0xc07   :  { %v3470_v36 = vpop.eup %3469  ;;  %v1279_v40 = vmul.f32 %v3468_v54, %v3893_v1 }
 0xc08   :  { %v1374_v51 = vmul.f32 %v3470_v36, %v3895_v2 }
 0xc66   :  { %v1282_v35 = vpop.permute.xlu0 %1281 }
 0xc67   :  { %v1284_v29 = vmul.f32 %v3468_v54, %v1282_v35 }
 0xc69   :  { %1286 = vrot.lane.b32.xlu0 %v1284_v29, %s3562_s20 }
 0xc6b   :  { %v1377_v38 = vpop.permute.xlu1 %1376 }
 0xc6c   :  { %v1379_v39 = vmul.f32 %v3470_v36, %v1377_v38 }
 0xc6e   :  { %1381 = vrot.lane.b32.xlu1 %v1379_v39, %s3562_s20 }
 0xcdb   :  { %v1287_v41 = vpop.permute.xlu0 %1286 }
 0xcdc   :  { %v3932_v42 = vadd.f32 %v1287_v41, %v1279_v40 }
 0xcde   :  { %3471 = vtanh.f32 %v3932_v42 }
 0xce0   :  { %v1382_v45 = vpop.permute.xlu1 %1381 }
 0xce1   :  { %v3936_v46 = vadd.f32 %v1382_v45, %v1374_v51 }
 0xce3   :  { %3473 = vtanh.f32 %v3936_v46 }
 0xce8   :  { %v3472_v47 = vpop.eup %3471 }
 0xce9   :  { %1292 = vrot.lane.b32.xlu0 %v3472_v47, %s3561_s19  ;;  %v190_v47 = vadd.f32 %v3689_v13, %v3784_v58 }
 0xced   :  { %v3474_v48 = vpop.eup %3473 }
 0xcee   :  { %1387 = vrot.lane.b32.xlu1 %v3474_v48, %s3561_s19 }
 0xd5b   :  { %v1293_v49 = vpop.permute.xlu0 %1292 }
 0xd5c   :  { %v1295_v50 = vmul.f32 %v3468_v54, %v1293_v49 }
 0xd5e   :  { %1392 = vrot.lane.b32.xlu0 %v1295_v50, %s3562_s20 }
 0xd60   :  { %v1388_v55 = vpop.permute.xlu1 %1387 }
 0xd61   :  { %v1390_v57 = vmul.f32 %v3470_v36, %v1388_v55 }
 0xd63   :  { %1467 = vrot.lane.b32.xlu1 %v1390_v57, %s3562_s20 }
 0xdd0   :  { %v1393_v59 = vpop.permute.xlu0 %1392 }
 0xdd1   :  { %3071 = vmatmul.mubr.msk.f32.vlgmr.msra.gmra.mrb[14].mxu1 %vm211_vm2, %v1393_v59 }
 0xdd2   :  { %3320 = vmatpush3.bf16.msra.mxu1 %v3661_v7  ;;  %3092 = vmatprep.mubr.msk.f32.mxu1 %vm3559_vm1, %v3560_v10 }
 0xdd3   :  { %3321 = vmatprep.subr.bf16.mxu1 %v3558_v3 }
 0xdd5   :  { %v1468_v60 = vpop.permute.xlu1 %1467 }
 0xdd6   :  { %3323 = vmatpush3.bf16.msra.mxu1 %v3676_v12  ;;  %3082 = vmatmul.mubr.msk.f32.vlgmr.msra.gmra.mrb[20].mxu0 %vm211_vm2, %v1468_v60 }
 0xdd7   :  { %3326 = vmatpush3.bf16.msra.mxu0 %v3719_v37  ;;  %3330 = vmatprep.subr.bf16.mxu1 %v3558_v3 }
 0xdd8   :  { %3327 = vmatprep.subr.bf16.mxu0 %v3558_v3  ;;  %3103 = vmatprep.mubr.msk.f32.mxu0 %vm3559_vm1, %v3560_v10 }
 0xdd9   :  { %3093 = vmatmul.mubr.msk.f32.vlgmr.msra.gmra.mrb[16].mxu1 %vm211_vm2, %v1468_v60 }
 0xdda   :  { %3332 = vmatpush3.bf16.msra.mxu1 %v3708_v33  ;;  %3114 = vmatprep.mubr.msk.f32.mxu1 %vm3559_vm1, %v3560_v10 }
 0xddb   :  { %3329 = vmatpush3.bf16.msra.mxu0 %v3740_v43  ;;  %3333 = vmatprep.subr.bf16.mxu1 %v3558_v3 }
 0xddc   :  { %3336 = vmatprep.subr.bf16.mxu0 %v3558_v3 }
 0xdde   :  { %3335 = vmatpush3.bf16.msra.mxu1 %v3742_v44 }
 0xddf   :  { %3342 = vmatprep.subr.bf16.mxu1 %v3558_v3 }
 0xea4   :  { %v1462_v62 = vpop.f32.mrb[14].mxu1 }
 0xea5   :  { %v3072_v63 = vpop.f32.mrb[15].mxu1 }
 0xea9   :  { %v1537_v0 = vpop.f32.mrb[20].mxu0 }
 0xeaa   :  { %v1538_v1 = vadd.f32 %v1537_v0, %v1462_v62  ;;  %v3083_v2 = vpop.f32.mrb[21].mxu0 }
 0xeac   :  { %v1541_v4 = vadd.f32 %v3805_v61, %v1538_v1  ;;  %v1632_v5 = vpop.f32.mrb[16].mxu1 }
 0xead   :  { %v1636_v6 = vadd.f32 %v1632_v5, %v185_v52  ;;  %v3094_v8 = vpop.f32.mrb[17].mxu1 }
 0xeae   :  { %3475 = vtanh.f32 %v1541_v4  ;;  %v2730_v14 = vmul.f32 -1.442695, %v1541_v4 }
 0xeaf   :  { %3477 = vtanh.f32 %v1636_v6  ;;  %v2732_v15 = vmul.f32 -1.442695, %v1636_v6 }
 0xeb0   :  { %3479 = vpow2.f32 %v2730_v14 }
 0xeb1   :  { %3481 = vpow2.f32 %v2732_v15 }
 0xeb8   :  { %v3476_v9 = vpop.eup %3475 }
 0xeb9   :  { %v3478_v11 = vpop.eup %3477  ;;  %1551 = vrot.lane.b32.xlu0 %v3476_v9, %s3561_s19 }
 0xeba   :  { %1646 = vrot.lane.b32.xlu1 %v3478_v11, %s3561_s19  ;;  %v3480_v16 = vpop.eup %3479 }
 0xebb   :  { %v3482_v17 = vpop.eup %3481  ;;  %v1545_v53 = vadd.f32 1.0, %v3480_v16 }
 0xebc   :  { %v1640_v18 = vadd.f32 1.0, %v3482_v17 }
 0xebd   :  { %3483 = vrcp.f32 %v1545_v53 }
 0xebe   :  { %3485 = vrcp.f32 %v1640_v18 }
 0xec7   :  { %v3484_v19 = vpop.eup %3483 }
 0xec8   :  { %v3486_v21 = vpop.eup %3485  ;;  %v1549_v25 = vmul.f32 %v3484_v19, %v3932_v42 }
 0xec9   :  { %v1644_v26 = vmul.f32 %v3486_v21, %v3936_v46 }
 0xf2b   :  { %v1552_v20 = vpop.permute.xlu0 %1551 }
 0xf2c   :  { %v1647_v22 = vpop.permute.xlu1 %1646  ;;  %v1554_v23 = vmul.f32 %v3484_v19, %v1552_v20 }
 0xf2d   :  { %v1649_v24 = vmul.f32 %v3486_v21, %v1647_v22 }
 0xf2e   :  { %1556 = vrot.lane.b32.xlu0 %v1554_v23, %s3562_s20 }
 0xf2f   :  { %1651 = vrot.lane.b32.xlu1 %v1649_v24, %s3562_s20 }
 0xfa0   :  { %v1557_v27 = vpop.permute.xlu0 %1556 }
 0xfa1   :  { %v1652_v28 = vpop.permute.xlu1 %1651  ;;  %v3973_v30 = vadd.f32 %v1557_v27, %v1549_v25 }
 0xfa2   :  { %v3975_v31 = vadd.f32 %v1652_v28, %v1644_v26 }
 0xfa3   :  { %3487 = vtanh.f32 %v3973_v30 }
 0xfa4   :  { %3489 = vtanh.f32 %v3975_v31 }
 0xfad   :  { %v3488_v32 = vpop.eup %3487 }
 0xfae   :  { %v3490_v34 = vpop.eup %3489  ;;  %1562 = vrot.lane.b32.xlu0 %v3488_v32, %s3561_s19 }
 0xfaf   :  { %1657 = vrot.lane.b32.xlu1 %v3490_v34, %s3561_s19 }
0x1020   :  { %v1563_v54 = vpop.permute.xlu0 %1562 }
0x1021   :  { %v1658_v35 = vpop.permute.xlu1 %1657  ;;  %v1565_v29 = vmul.f32 %v3484_v19, %v1563_v54 }
0x1022   :  { %v1660_v36 = vmul.f32 %v3486_v21, %v1658_v35 }
0x1023   :  { %1662 = vrot.lane.b32.xlu0 %v1565_v29, %s3562_s20 }
0x1024   :  { %1737 = vrot.lane.b32.xlu1 %v1660_v36, %s3562_s20 }
0x1095   :  { %v1663_v38 = vpop.permute.xlu0 %1662 }
0x1096   :  { %v1738_v39 = vpop.permute.xlu1 %1737  ;;  %3104 = vmatmul.mubr.msk.f32.vlgmr.msra.gmra.mrb[22].mxu0 %vm211_vm2, %v1663_v38 }
0x1097   :  { %3115 = vmatmul.mubr.msk.f32.vlgmr.msra.gmra.mrb[18].mxu1 %vm211_vm2, %v1738_v39  ;;  %3338 = vmatpush3.bf16.msra.mxu0 %v3661_v7 }
0x1098   :  { %3339 = vmatprep.subr.bf16.mxu0 %v3558_v3  ;;  %3125 = vmatprep.mubr.msk.f32.mxu0 %vm3559_vm1, %v3560_v10 }
0x1099   :  { %3344 = vmatpush3.bf16.msra.mxu1 %v3719_v37  ;;  %3136 = vmatprep.mubr.msk.f32.mxu1 %vm3559_vm1, %v3560_v10 }
0x109a   :  { %3345 = vmatprep.subr.bf16.mxu1 %v3558_v3 }
0x109b   :  { %3341 = vmatpush3.bf16.msra.mxu0 %v3676_v12 }
0x109c   :  { %3348 = vmatprep.subr.bf16.mxu0 %v3558_v3 }
0x109d   :  { %3347 = vmatpush3.bf16.msra.mxu1 %v3740_v43 }
0x109e   :  { %3126 = vmatmul.mubr.msk.f32.vlgmr.msra.gmra.mrb[24].mxu0 %vm211_vm2, %v1738_v39  ;;  %3354 = vmatprep.subr.bf16.mxu1 %v3558_v3 }
0x109f   :  { %3350 = vmatpush3.bf16.msra.mxu0 %v3708_v33  ;;  %3147 = vmatprep.mubr.msk.f32.mxu0 %vm3559_vm1, %v3560_v10 }
0x10a0   :  { %3351 = vmatprep.subr.bf16.mxu0 %v3558_v3 }
0x10a3   :  { %3353 = vmatpush3.bf16.msra.mxu0 %v3742_v44 }
0x10a4   :  { %3360 = vmatprep.subr.bf16.mxu0 %v3558_v3 }
0x1169   :  { %v1732_v40 = vpop.f32.mrb[22].mxu0 }
0x116a   :  { %v1807_v41 = vpop.f32.mrb[18].mxu1  ;;  %v3105_v42 = vpop.f32.mrb[23].mxu0 }
0x116b   :  { %v1808_v51 = vadd.f32 %v1807_v41, %v1732_v40  ;;  %v3116_v45 = vpop.f32.mrb[19].mxu1 }
0x116d   :  { %v1811_v46 = vadd.f32 %v3805_v61, %v1808_v51 }
0x116f   :  { %3491 = vtanh.f32 %v1811_v46  ;;  %v2735_v59 = vmul.f32 -1.442695, %v1811_v46 }
0x1171   :  { %v1902_v48 = vpop.f32.mrb[24].mxu0 }
0x1172   :  { %v1906_v49 = vadd.f32 %v1902_v48, %v190_v47  ;;  %v3127_v50 = vpop.f32.mrb[25].mxu0 }
0x1174   :  { %3493 = vtanh.f32 %v1906_v49  ;;  %v2737_v60 = vmul.f32 -1.442695, %v1906_v49 }
0x1175   :  { %3495 = vpow2.f32 %v2735_v59 }
0x1176   :  { %3497 = vpow2.f32 %v2737_v60 }
0x1179   :  { %v3492_v55 = vpop.eup %3491 }
0x117a   :  { %1821 = vrot.lane.b32.xlu0 %v3492_v55, %s3561_s19 }
0x117e   :  { %v3494_v57 = vpop.eup %3493 }
0x117f   :  { %1916 = vrot.lane.b32.xlu1 %v3494_v57, %s3561_s19  ;;  %v3496_v62 = vpop.eup %3495 }
0x1180   :  { %v1815_v63 = vadd.f32 1.0, %v3496_v62  ;;  %v3498_v0 = vpop.eup %3497 }
0x1181   :  { %v1910_v1 = vadd.f32 1.0, %v3498_v0 }
0x1182   :  { %3499 = vrcp.f32 %v1815_v63 }
0x1183   :  { %3501 = vrcp.f32 %v1910_v1 }
0x118c   :  { %v3500_v13 = vpop.eup %3499 }
0x118d   :  { %v3502_v52 = vpop.eup %3501  ;;  %v1819_v6 = vmul.f32 %v3500_v13, %v3973_v30 }
0x118e   :  { %v1914_v11 = vmul.f32 %v3502_v52, %v3975_v31 }
0x11ec   :  { %v1822_v58 = vpop.permute.xlu0 %1821 }
0x11ed   :  { %v1824_v2 = vmul.f32 %v3500_v13, %v1822_v58 }
0x11ef   :  { %1826 = vrot.lane.b32.xlu0 %v1824_v2, %s3562_s20 }
0x11f1   :  { %v1917_v4 = vpop.permute.xlu1 %1916 }
0x11f2   :  { %v1919_v5 = vmul.f32 %v3502_v52, %v1917_v4 }
0x11f4   :  { %1921 = vrot.lane.b32.xlu1 %v1919_v5, %s3562_s20 }
0x1261   :  { %v1827_v8 = vpop.permute.xlu0 %1826 }
0x1262   :  { %v4012_v9 = vadd.f32 %v1827_v8, %v1819_v6 }
0x1264   :  { %3503 = vtanh.f32 %v4012_v9 }
0x1266   :  { %v1922_v14 = vpop.permute.xlu1 %1921 }
0x1267   :  { %v4016_v15 = vadd.f32 %v1922_v14, %v1914_v11 }
0x1269   :  { %3505 = vtanh.f32 %v4016_v15 }
0x126e   :  { %v3504_v16 = vpop.eup %3503 }
0x126f   :  { %1832 = vrot.lane.b32.xlu0 %v3504_v16, %s3561_s19 }
0x1273   :  { %v3506_v17 = vpop.eup %3505 }
0x1274   :  { %1927 = vrot.lane.b32.xlu1 %v3506_v17, %s3561_s19 }
0x12e1   :  { %v1833_v53 = vpop.permute.xlu0 %1832 }
0x12e2   :  { %v1835_v18 = vmul.f32 %v3500_v13, %v1833_v53 }
0x12e4   :  { %1932 = vrot.lane.b32.xlu0 %v1835_v18, %s3562_s20  ;;  %v2747_v18 = vld [vmem:[%s4163_s8] ss:$0 sm:$0xff] }
0x12e6   :  { %v1928_v19 = vpop.permute.xlu1 %1927 }
0x12e7   :  { %v1930_v20 = vmul.f32 %v3502_v52, %v1928_v19  ;;  %v2423_v19 = vld [vmem:[%s4164_s9] sm:$0xff] }
0x12e9   :  { %2007 = vrot.lane.b32.xlu1 %v1930_v20, %s3562_s20  ;;  %v2424_v20 = vld [vmem:[%s4164_s9 + $0x8] sm:$0xff] }
0x1356   :  { %v1933_v21 = vpop.permute.xlu0 %1932 }
0x1357   :  { %3137 = vmatmul.mubr.msk.f32.vlgmr.msra.gmra.mrb[20].mxu1 %vm211_vm2, %v1933_v21  ;;  %v2425_v21 = vld [vmem:[%s4164_s9 + $0x10] sm:$0xff] }
0x1358   :  { %3356 = vmatpush3.bf16.msra.mxu1 %v3661_v7  ;;  %3158 = vmatprep.mubr.msk.f32.mxu1 %vm3559_vm1, %v3560_v10 }
0x1359   :  { %3357 = vmatprep.subr.bf16.mxu1 %v3558_v3 }
0x135b   :  { %v2008_v22 = vpop.permute.xlu1 %2007 }
0x135c   :  { %3359 = vmatpush3.bf16.msra.mxu1 %v3676_v12  ;;  %3148 = vmatmul.mubr.msk.f32.vlgmr.msra.gmra.mrb[26].mxu0 %vm211_vm2, %v2008_v22 }
0x135d   :  { %3366 = vmatprep.subr.bf16.mxu1 %v3558_v3  ;;  %3362 = vmatpush3.bf16.msra.mxu0 %v3719_v37 }
0x135e   :  { %3363 = vmatprep.subr.bf16.mxu0 %v3558_v3  ;;  %3169 = vmatprep.mubr.msk.f32.mxu0 %vm3559_vm1, %v3560_v10 }
0x135f   :  { %3159 = vmatmul.mubr.msk.f32.vlgmr.msra.gmra.mrb[22].mxu1 %vm211_vm2, %v2008_v22  ;;  %v3373_v22 = vpack.c.bf16 %v2424_v20, %v2423_v19  ;;  %v2752_v19 = vld [vmem:[%s4169_s14] ss:$0 sm:$0xff] }
0x1360   :  { %3368 = vmatpush3.bf16.msra.mxu1 %v3708_v33  ;;  %3180 = vmatprep.mubr.msk.f32.mxu1 %vm3559_vm1, %v3560_v10  ;;  %v3533_v33 = vld [vmem:[%s4158_s3] ss:$0 sm:$0xff] }
0x1361   :  { %3369 = vmatprep.subr.bf16.mxu1 %v3558_v3  ;;  %3365 = vmatpush3.bf16.msra.mxu0 %v3740_v43  ;;  %v195_v25 = vadd.f32 %v3533_v33, %v3782_v56 }
0x1362   :  { %3372 = vmatprep.subr.bf16.mxu0 %v3558_v3 }
0x1364   :  { %3371 = vmatpush3.bf16.msra.mxu1 %v3742_v44 }
0x1365   :  { %3378 = vmatprep.subr.bf16.mxu1 %v3558_v3 }
0x142a   :  { %v2002_v7 = vpop.f32.mrb[20].mxu1 }
0x142b   :  { %v3138_v12 = vpop.f32.mrb[21].mxu1 }
0x142f   :  { %v2077_v37 = vpop.f32.mrb[26].mxu0 }
0x1430   :  { %v2078_v23 = vadd.f32 %v2077_v37, %v2002_v7  ;;  %v3149_v24 = vpop.f32.mrb[27].mxu0  ;;  %v2426_v7 = vld [vmem:[%s4164_s9 + $0x18] sm:$0xff]  ;;  %v2376_v37 = vlaneseq }
0x1431   :  { %v3376_v12 = vpack.c.bf16 %v2426_v7, %v2425_v21 }
0x1432   :  { %v2081_v26 = vadd.f32 %v3805_v61, %v2078_v23  ;;  %v2172_v43 = vpop.f32.mrb[22].mxu1  ;;  %v2377_v23 = vshrl.u32 %v2376_v37, 7 }
0x1433   :  { %v2176_v27 = vadd.f32 %v2172_v43, %v195_v25  ;;  %v3160_v28 = vpop.f32.mrb[23].mxu1 }
0x1434   :  { %3507 = vtanh.f32 %v2081_v26  ;;  %v2740_v31 = vmul.f32 -1.442695, %v2081_v26  ;;  %vm2378_vm3 = vcmp.lt.s32.totalorder %v2377_v23, 2 }
0x1435   :  { %3509 = vtanh.f32 %v2176_v27  ;;  %v2742_v32 = vmul.f32 -1.442695, %v2176_v27 }
0x1436   :  { %3511 = vpow2.f32 %v2740_v31 }
0x1437   :  { %3513 = vpow2.f32 %v2742_v32 }
0x143e   :  { %v3508_v44 = vpop.eup %3507 }
0x143f   :  { %v3510_v30 = vpop.eup %3509  ;;  %2091 = vrot.lane.b32.xlu0 %v3508_v44, %s3561_s19 }
0x1440   :  { %2186 = vrot.lane.b32.xlu1 %v3510_v30, %s3561_s19  ;;  %v3512_v34 = vpop.eup %3511 }
0x1441   :  { %v3514_v54 = vpop.eup %3513  ;;  %v2085_v56 = vadd.f32 1.0, %v3512_v34 }
0x1442   :  { %v2180_v35 = vadd.f32 1.0, %v3514_v54 }
0x1443   :  { %3515 = vrcp.f32 %v2085_v56 }
0x1444   :  { %3517 = vrcp.f32 %v2180_v35 }
0x144d   :  { %v3516_v29 = vpop.eup %3515 }
0x144e   :  { %v3518_v38 = vpop.eup %3517  ;;  %v2089_v42 = vmul.f32 %v3516_v29, %v4012_v9 }
0x144f   :  { %v2184_v51 = vmul.f32 %v3518_v38, %v4016_v15  ;;  %v2746_v15 = vld [vmem:[%s4162_s7] ss:$0 sm:$0xff] }
0x14b1   :  { %v2092_v36 = vpop.permute.xlu0 %2091 }
0x14b2   :  { %v2187_v39 = vpop.permute.xlu1 %2186  ;;  %v2094_v40 = vmul.f32 %v3516_v29, %v2092_v36 }
0x14b3   :  { %v2189_v41 = vmul.f32 %v3518_v38, %v2187_v39 }
0x14b4   :  { %2096 = vrot.lane.b32.xlu0 %v2094_v40, %s3562_s20 }
0x14b5   :  { %2191 = vrot.lane.b32.xlu1 %v2189_v41, %s3562_s20 }
0x1526   :  { %v2097_v45 = vpop.permute.xlu0 %2096 }
0x1527   :  { %v2192_v46 = vpop.permute.xlu1 %2191  ;;  %v2099_v47 = vadd.f32 %v2097_v45, %v2089_v42  ;;  %v2509_v45 = vld [vmem:[%s4166_s11] sm:$0xff] }
0x1528   :  { %v2194_v48 = vadd.f32 %v2192_v46, %v2184_v51  ;;  %v2510_v46 = vld [vmem:[%s4166_s11 + $0x8] sm:$0xff] }
0x1529   :  { %3519 = vtanh.f32 %v2099_v47 }
0x152a   :  { %3521 = vtanh.f32 %v2194_v48  ;;  %v3379_v48 = vpack.c.bf16 %v2510_v46, %v2509_v45 }
0x1533   :  { %v3520_v49 = vpop.eup %3519 }
0x1534   :  { %v3522_v50 = vpop.eup %3521  ;;  %2102 = vrot.lane.b32.xlu0 %v3520_v49, %s3561_s19  ;;  %v2512_v49 = vld [vmem:[%s4166_s11 + $0x18] sm:$0xff] }
0x1535   :  { %2197 = vrot.lane.b32.xlu1 %v3522_v50, %s3561_s19 }
0x15a6   :  { %v2103_v55 = vpop.permute.xlu0 %2102 }
0x15a7   :  { %v2198_v57 = vpop.permute.xlu1 %2197  ;;  %v2105_v59 = vmul.f32 %v3516_v29, %v2103_v55  ;;  %v2513_v55 = vld [vmem:[%s4166_s11 + $0x20] sm:$0xff] }
0x15a8   :  { %v2200_v60 = vmul.f32 %v3518_v38, %v2198_v57  ;;  %v2514_v57 = vld [vmem:[%s4166_s11 + $0x28] sm:$0xff] }
0x15a9   :  { %2202 = vrot.lane.b32.xlu0 %v2105_v59, %s3562_s20 }
0x15aa   :  { %2277 = vrot.lane.b32.xlu1 %v2200_v60, %s3562_s20 }
0x161b   :  { %v2203_v62 = vpop.permute.xlu0 %2202 }
0x161c   :  { %v2278_v63 = vpop.permute.xlu1 %2277  ;;  %3170 = vmatmul.mubr.msk.f32.vlgmr.msra.gmra.mrb[28].mxu0 %vm211_vm2, %v2203_v62 }
0x161d   :  { %3181 = vmatmul.mubr.msk.f32.vlgmr.msra.gmra.mrb[24].mxu1 %vm211_vm2, %v2278_v63  ;;  %3191 = vmatprep.mubr.msk.f32.mxu0 %vm3559_vm1, %v3560_v10  ;;  %v3385_v63 = vpack.c.bf16 %v2514_v57, %v2513_v55 }
0x161e   :  { %3210 = vmatprep.mubr.msk.f32.mxu1 %vm3559_vm1, %v3560_v10  ;;  %3374 = vmatpush3.bf16.msra.mxu0 %v3373_v22 }
0x161f   :  { %3375 = vmatprep.subr.bf16.mxu0 %v3558_v3  ;;  %3380 = vmatpush3.bf16.msra.mxu1 %v3379_v48 }
0x1620   :  { %3381 = vmatprep.subr.bf16.mxu1 %v3558_v3 }
0x1622   :  { %3377 = vmatpush3.bf16.msra.mxu0 %v3376_v12 }
0x1623   :  { %3390 = vmatprep.subr.bf16.mxu0 %v3558_v3 }
0x16ef   :  { %v2272_v0 = vpop.f32.mrb[28].mxu0 }
0x16f0   :  { %v2347_v1 = vpop.f32.mrb[24].mxu1  ;;  %v3171_v13 = vpop.f32.mrb[29].mxu0 }
0x16f1   :  { %v2348_v58 = vadd.f32 %v2347_v1, %v2272_v0  ;;  %v3182_v2 = vpop.f32.mrb[25].mxu1 }
0x16f2   :  { %v2515_v2 = vld [vmem:[%s4166_s11 + $0x30] sm:$0xff] }
0x16f3   :  { %v2351_v52 = vadd.f32 %v3805_v61, %v2348_v58 }
0x16f5   :  { %3523 = vtanh.f32 %v2351_v52  ;;  %v2745_v5 = vmul.f32 -1.442695, %v2351_v52  ;;  %v2516_v52 = vld [vmem:[%s4166_s11 + $0x38] sm:$0xff] }
0x16f7   :  { %3525 = vpow2.f32 %v2745_v5  ;;  %v2598_v5 = vld [vmem:[%s4168_s13] sm:$0xff] }
0x16ff   :  { %v3524_v4 = vpop.eup %3523 }
0x1700   :  { %2361 = vrot.lane.b32.xlu0 %v3524_v4, %s3561_s19  ;;  %v3388_v4 = vpack.c.bf16 %v2516_v52, %v2515_v2 }
0x1701   :  { %v3526_v6 = vpop.eup %3525 }
0x1702   :  { %v2355_v8 = vadd.f32 1.0, %v3526_v6  ;;  %v2599_v6 = vld [vmem:[%s4168_s13 + $0x8] sm:$0xff] }
0x1704   :  { %3527 = vrcp.f32 %v2355_v8  ;;  %v3391_v8 = vpack.c.bf16 %v2599_v6, %v2598_v5 }
0x170e   :  { %v3528_v9 = vpop.eup %3527 }
0x170f   :  { %v2359_v61 = vmul.f32 %v3528_v9, %v2099_v47  ;;  %v2511_v47 = vld [vmem:[%s4166_s11 + $0x10] sm:$0xff] }
0x1710   :  { %v3382_v50 = vpack.c.bf16 %v2512_v49, %v2511_v47 }
0x1712   :  { %3383 = vmatpush3.bf16.msra.mxu1 %v3382_v50 }
0x1713   :  { %3384 = vmatprep.subr.bf16.mxu1 %v3558_v3 }
0x1716   :  { %3386 = vmatpush3.bf16.msra.mxu1 %v3385_v63 }
0x1717   :  { %3387 = vmatprep.subr.bf16.mxu1 %v3558_v3 }
0x171a   :  { %3389 = vmatpush3.bf16.msra.mxu1 %v3388_v4 }
0x1772   :  { %v2362_v11 = vpop.permute.xlu0 %2361 }
0x1773   :  { %v2364_v14 = vmul.f32 %v3528_v9, %v2362_v11 }
0x1775   :  { %2366 = vrot.lane.b32.xlu1 %v2364_v14, %s3562_s20 }
0x1779   :  { %2409 = vrot.lane.b32.xlu1 %v2746_v15, %s3563_s18  ;;  %v2600_v15 = vld [vmem:[%s4168_s13 + $0x10] sm:$0xff] }
0x17e7   :  { %v2367_v16 = vpop.permute.xlu1 %2366 }
0x17e8   :  { %v2369_v17 = vadd.f32 %v2367_v16, %v2359_v61  ;;  %v2601_v61 = vld [vmem:[%s4168_s13 + $0x18] sm:$0xff]  ;;  %s3534_s13 = scalar_lea.vmem %s2691_s4, 32 }
0x17e9   :  { %v3394_v16 = vpack.c.bf16 %v2601_v61, %v2600_v15  ;;  %p3535_p0 = scmp.ne.s32.totalorder %s2691_s4, %s3534_s13  ;;  %p3540_p2 = scmp.lt.s32.totalorder %s3534_s13, %s3534_s13 }
0x17ea   :  { %3529 = vtanh.f32 %v2369_v17 }
0x17eb   :  { %v2410_v60 = vpop.permute.xlu1 %2409  ;;  %p3541_p3 = por %p3540_p2, %p3539_p1 }
0x17ed   :  { %p3542_p4 = pnand %p3541_p3, %p3535_p0 }
0x17f4   :  { %v3530_v53 = vpop.eup %3529 }
0x17f5   :  { %2372 = vrot.lane.b32.xlu0 %v3530_v53, %s3561_s19 }
0x17f9   :  { %2419 = vrot.lane.b32.xlu0 %v2747_v18, %s3563_s18 }
0x1867   :  { %v2373_v24 = vpop.permute.xlu0 %2372 }
0x1868   :  { %v2375_v33 = vmul.f32 %v3528_v9, %v2373_v24 }
0x186a   :  { %v2379_v25 = vsel %vm2378_vm3, %v2375_v33, 0.0 }
0x186b   :  { %v2381_v26 = vsel %vm2380_vm4, %v2379_v25, 0.0  ;;  %v2420_v0 = vpop.permute.xlu0 %2419 }
0x186c   :  { %v2382_v43 = vrot.slane %v2381_v26, 4 }
0x186e   :  { %v2383_v27 = vadd.f32 %v2382_v43, %v2381_v26 }
0x1870   :  { %v2384_v28 = vrot.slane %v2383_v27, 2 }
0x1872   :  { %v2385_v44 = vadd.f32 %v2384_v28, %v2383_v27 }
0x1874   :  { %v2386_v30 = vrot.slane %v2385_v44, 1 }
0x1876   :  { %v2387_v31 = vadd.f32 %v2386_v30, %v2385_v44 }
0x1878   :  { %v2388_v32 = vmul.f32 0.5, %v2387_v31 }
0x187a   :  { %v2389_v34 = vsub.f32 %v2375_v33, %v2388_v32 }
0x187c   :  { %v2390_v54 = vsel %vm2378_vm3, %v2389_v34, 0.0 }
0x187d   :  { %v2391_v56 = vmul.f32 %v2390_v54, %v2390_v54 }
0x187f   :  { %v2392_v35 = vsel %vm2380_vm4, %v2391_v56, 0.0 }
0x1880   :  { %v2393_v29 = vrot.slane %v2392_v35, 4 }
0x1882   :  { %v2394_v36 = vadd.f32 %v2393_v29, %v2392_v35 }
0x1884   :  { %v2395_v38 = vrot.slane %v2394_v36, 2 }
0x1886   :  { %v2396_v39 = vadd.f32 %v2395_v38, %v2394_v36 }
0x1888   :  { %v2397_v40 = vrot.slane %v2396_v39, 1 }
0x188a   :  { %v2398_v41 = vadd.f32 %v2397_v40, %v2396_v39 }
0x188c   :  { %v2399_v42 = vmul.f32 0.5, %v2398_v41 }
0x188e   :  { %v2400_v51 = vadd.f32 1e-05, %v2399_v42 }
0x1890   :  { %3531 = vrsqrt.f32 %v2400_v51 }
0x189a   :  { %v3532_v59 = vpop.eup %3531 }
0x189b   :  { %v2402_v62 = vmul.f32 %v3532_v59, %v2389_v34 }
0x189d   :  { %v2412_v1 = vmul.f32 %v2410_v60, %v2402_v62 }
0x189f   :  { %v2422_v13 = vadd.f32 %v2420_v0, %v2412_v1 }
0x18a1   :  { %2435 = vrot.lane.b32.xlu1 %v2422_v13, %s3562_s20 }
0x1913   :  { %v2436_v58 = vpop.permute.xlu1 %2435 }
0x1914   :  { %3192 = vmatmul.mubr.msk.f32.vlgmr.msra.gmra.mrb[30].mxu0 %vm211_vm2, %v2436_v58 }
0x1915   :  { %3221 = vmatprep.mubr.msk.f32.mxu0 %vm3559_vm1, %v3560_v10  ;;  %3392 = vmatpush3.bf16.msra.mxu0 %v3391_v8  ;;  %v2748_v10 = vld [vmem:[%s4165_s10] ss:$0 sm:$0xff] }
0x1916   :  { %3393 = vmatprep.subr.bf16.mxu0 %v3558_v3  ;;  %v2750_v3 = vld [vmem:[%s4167_s12] ss:$0 sm:$0xff] }
0x1919   :  { %3395 = vmatpush3.bf16.msra.mxu0 %v3394_v16 }
0x19e7   :  { %v2505_v9 = vpop.f32.mrb[30].mxu0 }
0x19e8   :  { %v2506_v11 = vadd.f32 %v2748_v10, %v2505_v9  ;;  %v3193_v14 = vpop.f32.mrb[31].mxu0 }
0x19ea   :  { %3211 = vmatmul.mubr.msk.f32.vlgmr.msra.gmra.mrb[26].mxu1 %vm2524_vm5, %v2506_v11 }
0x1abd   :  { %v2594_v17 = vpop.f32.mrb[26].mxu1 }
0x1abe   :  { %v2595_v53 = vadd.f32 %v2750_v3, %v2594_v17  ;;  %v3212_v18 = vpop.f32.mrb[27].mxu1 }
0x1ac0   :  { %3222 = vmatmul.mubr.msk.f32.vlgmr.msra.gmra.mrb[32].mxu0 %vm211_vm2, %v2595_v53 }
0x1b93   :  { %v2678_v20 = vpop.f32.mrb[32].mxu0 }
0x1b94   :  { %v2679_v21 = vadd.f32 %v2752_v19, %v2678_v20  ;;  %v3223_v22 = vpop.f32.mrb[33].mxu0 }
0x1b96   :  { %2683 = vst.msk [vmem:[#allocation2] sm:$0x3] %vm2682_vm6, %v2679_v21 }
0x1b97   :  { %3545 = shalt.err (!%p3542_p4)
}
0x1b98   :  { %s3546_s30 = scalar_lea.hbm %s4170_s15, 32 }
0x1b99   :  { %p3547_p5 = scmp.ne.s32.totalorder %s4170_s15, %s3546_s30  ;;  %p3550_p6 = scmp.lt.u32.totalorder %s3546_s30, %s4170_s15 }
0x1b9b   :  { %p3552_p7 = pnand %p3550_p6, %p3547_p5 }
0x1b9d   :  { %3555 = shalt.err (!%p3552_p7)
}
0x1b9e   :  { %2693 = dma.vmem_to_hbm [thread:$0]  %s2691_s4, 32, %s4170_s15, [#allocation3]  }
0x1b9f   :  { %3556 = dma.done.wait [#allocation3], 32  }
0x1ba0   :  { %3557 = vsyncadd [#allocation3], 4294967264 }
0x1ba1   :  { %2697 = vsyncpa [#allocation3], 1 }

</bundles_post_ra>
